<compile_context>
chip_gen: v7x
topology: tpu7x:2x2x1
jax: 0.10.0
libtpu: 0.0.40
codegen_flags: <defaults>
</compile_context>

<pallas_src>
import numpy as np
import jax
import jax.numpy as jnp
from jax.experimental import pallas as pl
from jax.experimental.pallas import tpu as pltpu

# ---------------------------------------------------------------------------
# Problem sizes (small, consistent with the module)
# ---------------------------------------------------------------------------
B = 2                      # batch
CIN = 3                    # conv input channels (fixed by the module)
COUT = 16                  # conv output channels
H = W = 16                 # image height / width
HP, WP = H // 2, W // 2
POOLED = HP * WP           # 64 pooled spatial positions per image
FLAT = COUT * POOLED       # 1024 flattened features
HIDDEN = 512
NUM_JOINTS = 7
KC = 3 * 3 * CIN           # 27 im2col contraction entries
KCP = 32                   # contraction dim zero-padded to a sublane multiple
NPIX = B * H * W           # 512 conv output pixels across the batch

G = 2                      # grid steps over HIDDEN (FC1/FC2 chunking)
HID_BLK = HIDDEN // G      # 256


# ---------------------------------------------------------------------------
# Fused kernel: conv + bias + ReLU + pool + flatten + MLP, chunked over HIDDEN
# ---------------------------------------------------------------------------
def fused_kernel(p_ref, cw_ref, cb_ref, w1_ref, b1_ref, w2_ref, b2_ref,
                 o_ref, feats_ref, acc_ref):
    # p_ref : (KCP, NPIX)   bf16  transposed im2col, cols (a, b, batch, ph, pw)
    # cw_ref: (COUT, KCP)   bf16  conv weight, contraction (cin, kh, kw) + pad
    # cb_ref: (COUT, 1)     f32
    # w1_ref: (FLAT, HID_BLK) bf16   b1_ref: (1, HID_BLK) f32
    # w2_ref: (HID_BLK, NUM_JOINTS) bf16   b2_ref: (1, NUM_JOINTS) f32
    # o_ref : (B, NUM_JOINTS) f32
    # feats_ref: (B, FLAT) bf16 scratch   acc_ref: (B, NUM_JOINTS) f32 scratch
    g = pl.program_id(0)

    @pl.when(g == 0)
    def _():
        # Conv as one lane-dense MXU matmul over the whole batch:
        # (16, 32) @ (32, 512) -> (16, 512).
        y = jnp.dot(cw_ref[...], p_ref[...], preferred_element_type=jnp.float32)
        y = jnp.maximum(y + cb_ref[...], 0.0)                  # bias + ReLU

        # 2x2 max pool: the 4 pool-window members are 4 contiguous 128-lane
        # slabs (columns ordered (a, b, batch, ph, pw)) -> elementwise max.
        pooled = jnp.maximum(jnp.maximum(y[:, 0:128], y[:, 128:256]),
                             jnp.maximum(y[:, 256:384], y[:, 384:512]))
        # pooled: (COUT, B*POOLED) = (16, 128); lanes ordered (batch, ph, pw)

        # Flatten to PyTorch NCHW order (c, ph, pw) per batch.  Done with
        # 2*COUT small static-slice copies (robust, hidden under the next
        # w1-chunk DMA) instead of a sublane->lane reshape.
        for b in range(B):
            for c in range(COUT):
                feats_ref[b:b + 1, c * POOLED:(c + 1) * POOLED] = (
                    pooled[c:c + 1, b * POOLED:(b + 1) * POOLED]
                    .astype(feats_ref.dtype))
        acc_ref[...] = jnp.zeros_like(acc_ref)

    # FC1 chunk: (B, FLAT) @ (FLAT, HID_BLK), f32 accumulation, bias + ReLU.
    h = jnp.dot(feats_ref[...], w1_ref[...], preferred_element_type=jnp.float32)
    h = jnp.maximum(h + b1_ref[...], 0.0)

    # FC2 partial over this HIDDEN chunk, accumulated in f32.
    acc_ref[...] += jnp.dot(h.astype(jnp.bfloat16), w2_ref[...],
                            preferred_element_type=jnp.float32)

    @pl.when(g == pl.num_programs(0) - 1)
    def _():
        o_ref[...] = acc_ref[...] + b2_ref[...]


# ---------------------------------------------------------------------------
# Glue: im2col, one-time weight re-layout, pallas_call wrapper
# ---------------------------------------------------------------------------
def build_patches(x):
    """x: (B, CIN, H, W) NCHW -> (KCP, B*H*W) transposed im2col in bf16.

    Rows (contraction) ordered (cin, kh, kw), zero-padded 27 -> 32; columns
    ordered (a, b, batch, ph, pw) with output pixel (h, w) = (2*ph+a, 2*pw+b).
    """
    xp = jnp.pad(x, ((0, 0), (0, 0), (1, 1), (1, 1)))
    cols = []
    for ci in range(CIN):
        for dh in range(3):
            for dw in range(3):
                cols.append(xp[:, ci, dh:dh + H, dw:dw + W])   # (B, H, W)
    p = jnp.stack(cols, axis=0)                                # (27, B, H, W)
    p = p.reshape(KC, B, HP, 2, WP, 2)                         # (27, B, ph, a, pw, b)
    p = p.transpose(0, 3, 5, 1, 2, 4)                          # (27, a, b, B, ph, pw)
    p = p.reshape(KC, NPIX)
    p = jnp.pad(p, ((0, KCP - KC), (0, 0)))                    # K: 27 -> 32
    return p.astype(jnp.bfloat16)


def prepare_params(conv_w, conv_b, w1, b1, w2, b2):
    """One-time host-side re-layout / cast of PyTorch-shaped parameters."""
    # conv weight (COUT, CIN, 3, 3) -> (COUT, 27), contraction (cin, kh, kw).
    cw = conv_w.reshape(COUT, KC)
    cw = jnp.pad(cw, ((0, 0), (0, KCP - KC))).astype(jnp.bfloat16)   # (16, 32)
    # PyTorch flatten index is c*64 + ph*8 + pw, which matches the kernel's
    # flatten order exactly, so w1 only needs a transpose (and bf16 cast).
    return (cw,
            conv_b.reshape(COUT, 1).astype(jnp.float32),
            w1.T.astype(jnp.bfloat16),                  # (FLAT, HIDDEN)
            b1.reshape(1, HIDDEN).astype(jnp.float32),
            w2.T.astype(jnp.bfloat16),                  # (HIDDEN, NUM_JOINTS)
            b2.reshape(1, NUM_JOINTS).astype(jnp.float32))


_COST = pl.CostEstimate(
    flops=(2 * COUT * KCP * NPIX
           + 2 * B * FLAT * HIDDEN
           + 2 * B * HIDDEN * NUM_JOINTS),
    transcendentals=0,
    bytes_accessed=(KCP * NPIX * 2                     # patches (bf16)
                    + COUT * KCP * 2 + COUT * 4        # conv weight + bias
                    + FLAT * HIDDEN * 2                # w1 (bf16) -- dominant
                    + HIDDEN * 4                       # b1
                    + HIDDEN * NUM_JOINTS * 2 + NUM_JOINTS * 4
                    + B * NUM_JOINTS * 4),             # output
)


@jax.jit
def visuomotor_forward_pallas(x, cw, cb, w1_k, b1_k, w2_k, b2_k):
    """x: (B, 3, H, W) NCHW; weights already prepared via prepare_params."""
    patches = build_patches(x)
    grid_spec = pltpu.PrefetchScalarGridSpec(
        num_scalar_prefetch=0,
        grid=(G,),
        in_specs=[
            pl.BlockSpec((KCP, NPIX), lambda g: (0, 0)),            # patches (resident)
            pl.BlockSpec((COUT, KCP), lambda g: (0, 0)),            # conv weight
            pl.BlockSpec((COUT, 1), lambda g: (0, 0)),              # conv bias
            pl.BlockSpec((FLAT, HID_BLK), lambda g: (0, g)),        # w1 chunk (streamed)
            pl.BlockSpec((1, HID_BLK), lambda g: (0, g)),           # b1 chunk
            pl.BlockSpec((HID_BLK, NUM_JOINTS), lambda g: (g, 0)),  # w2 chunk
            pl.BlockSpec((1, NUM_JOINTS), lambda g: (0, 0)),        # b2
        ],
        out_specs=pl.BlockSpec((B, NUM_JOINTS), lambda g: (0, 0)),
        scratch_shapes=[pltpu.VMEM((B, FLAT), jnp.bfloat16),        # pooled features
                        pltpu.VMEM((B, NUM_JOINTS), jnp.float32)],  # FC2 accumulator
    )
    return pl.pallas_call(
        fused_kernel,
        out_shape=jax.ShapeDtypeStruct((B, NUM_JOINTS), jnp.float32),
        grid_spec=grid_spec,
        cost_estimate=_COST,
        compiler_params=pltpu.CompilerParams(
            # HIDDEN axis is a reduction for FC2 -> must stay "arbitrary".
            dimension_semantics=("arbitrary",),
            vmem_limit_bytes=16 * 1024 * 1024),
    )(patches, cw, cb, w1_k, b1_k, w2_k, b2_k)


# ---------------------------------------------------------------------------
# Pure-JAX reference (mirrors the PyTorch forward exactly, NCHW, f32)
# ---------------------------------------------------------------------------
def reference_forward(x, conv_w, conv_b, w1, b1, w2, b2):
    hi = jax.lax.Precision.HIGHEST
    y = jax.lax.conv_general_dilated(
        x, conv_w, window_strides=(1, 1), padding=((1, 1), (1, 1)),
        dimension_numbers=("NCHW", "OIHW", "NCHW"), precision=hi)
    y = jnp.maximum(y + conv_b[None, :, None, None], 0.0)
    y = jax.lax.reduce_window(y, -jnp.inf, jax.lax.max,
                              (1, 1, 2, 2), (1, 1, 2, 2), "VALID")
    flat = y.reshape(B, -1)                                  # (c, ph, pw) order
    h = jnp.maximum(jnp.dot(flat, w1.T, precision=hi) + b1, 0.0)
    return jnp.dot(h, w2.T, precision=hi) + b2


# ---------------------------------------------------------------------------
if __name__ == "__main__":
    key = jax.random.PRNGKey(0)
    ks = jax.random.split(key, 7)

    def uinit(k, shape, fan_in):
        bound = 1.0 / np.sqrt(fan_in)
        return jax.random.uniform(k, shape, jnp.float32, -bound, bound)

    # PyTorch-shaped, deterministically initialized parameters
    conv_w = uinit(ks[0], (COUT, CIN, 3, 3), CIN * 9)
    conv_b = uinit(ks[1], (COUT,), CIN * 9)
    w1 = uinit(ks[2], (HIDDEN, FLAT), FLAT)
    b1 = uinit(ks[3], (HIDDEN,), FLAT)
    w2 = uinit(ks[4], (NUM_JOINTS, HIDDEN), HIDDEN)
    b2 = uinit(ks[5], (NUM_JOINTS,), HIDDEN)

    x = jax.random.normal(ks[6], (B, CIN, H, W), jnp.float32)

    params = prepare_params(conv_w, conv_b, w1, b1, w2, b2)
    out = jax.block_until_ready(visuomotor_forward_pallas(x, *params))

    ref = jax.block_until_ready(
        reference_forward(x, conv_w, conv_b, w1, b1, w2, b2))

    # Kernel runs the bf16 fast path (patches, conv weight, w1, w2) with f32
    # accumulation; reference is f32 HIGHEST -> use a tolerance that
    # acknowledges the intentional low-precision weights (typ. err ~2e-3).
    np.testing.assert_allclose(np.asarray(out), np.asarray(ref),
                               rtol=2e-2, atol=2e-2)
    print("KERNEL_OK")
</pallas_src>

<mosaic_0001>
module attributes {stable_mosaic.version = 11 : i64} {
  func.func @fused_kernel(%arg0: i32, %arg1: memref<32x512xbf16, #tpu.memory_space<vmem>>, %arg2: memref<16x32xbf16, #tpu.memory_space<vmem>>, %arg3: memref<16x1xf32, #tpu.memory_space<vmem>>, %arg4: memref<1024x256xbf16, #tpu.memory_space<vmem>>, %arg5: memref<1x256xf32, #tpu.memory_space<vmem>>, %arg6: memref<256x7xbf16, #tpu.memory_space<vmem>>, %arg7: memref<1x7xf32, #tpu.memory_space<vmem>>, %arg8: memref<2x7xf32, #tpu.memory_space<vmem>>, %arg9: memref<2x1024xbf16, #tpu.memory_space<vmem>>, %arg10: memref<2x7xf32, #tpu.memory_space<vmem>>) attributes {dimension_semantics = [#tpu.dimension_semantics<arbitrary>], iteration_bounds = array<i64: 2>, scalar_prefetch = 0 : i64, scratch_operands = 2 : i64, tpu.core_type = #tpu.core_type<tc>, window_params = [{pipeline_mode = #tpu.pipeline_mode<synchronous>, transform_indices = @transform_0, window_bounds = array<i64: 32, 512>}, {pipeline_mode = #tpu.pipeline_mode<synchronous>, transform_indices = @transform_1, window_bounds = array<i64: 16, 32>}, {pipeline_mode = #tpu.pipeline_mode<synchronous>, transform_indices = @transform_2, window_bounds = array<i64: 16, 1>}, {transform_indices = @transform_3, window_bounds = array<i64: 1024, 256>}, {transform_indices = @transform_4, window_bounds = array<i64: 1, 256>}, {transform_indices = @transform_5, window_bounds = array<i64: 256, 7>}, {pipeline_mode = #tpu.pipeline_mode<synchronous>, transform_indices = @transform_6, window_bounds = array<i64: 1, 7>}, {pipeline_mode = #tpu.pipeline_mode<synchronous>, transform_indices = @transform_7, window_bounds = array<i64: 2, 7>}]} {
    %c0_i32 = arith.constant 0 : i32
    %0 = arith.cmpi eq, %arg0, %c0_i32 : i32
    %1 = arith.extui %0 : i1 to i32
    %c0_i32_0 = arith.constant 0 : i32
    %2 = arith.cmpi ne, %1, %c0_i32_0 : i32
    scf.if %2 {
      %c0_15 = arith.constant 0 : index
      %c0_16 = arith.constant 0 : index
      %20 = vector.load %arg2[%c0_15, %c0_16] : memref<16x32xbf16, #tpu.memory_space<vmem>>, vector<16x32xbf16>
      %c0_17 = arith.constant 0 : index
      %c0_18 = arith.constant 0 : index
      %21 = vector.load %arg1[%c0_17, %c0_18] : memref<32x512xbf16, #tpu.memory_space<vmem>>, vector<32x512xbf16>
      %cst_19 = arith.constant dense<0.000000e+00> : vector<16x512xf32>
      %22 = tpu.matmul %20, %21, %cst_19 {dimension_numbers = #tpu.dot_dimension_numbers<[1], [0], [0], [1], [0, 0, 1, 1], [], []>} : vector<16x32xbf16>, vector<32x512xbf16>, vector<16x512xf32> -> vector<16x512xf32>
      %c0_20 = arith.constant 0 : index
      %c0_21 = arith.constant 0 : index
      %23 = vector.load %arg3[%c0_20, %c0_21] : memref<16x1xf32, #tpu.memory_space<vmem>>, vector<16x1xf32>
      %24 = vector.broadcast %23 : vector<16x1xf32> to vector<16x512xf32>
      %25 = arith.addf %22, %24 : vector<16x512xf32>
      %cst_22 = arith.constant 0.000000e+00 : f32
      %26 = vector.broadcast %cst_22 : f32 to vector<16x512xf32>
      %27 = arith.maximumf %25, %26 : vector<16x512xf32>
      %28 = vector.extract_strided_slice %27 {offsets = [0, 0], sizes = [16, 128], strides = [1, 1]} : vector<16x512xf32> to vector<16x128xf32>
      %29 = vector.extract_strided_slice %27 {offsets = [0, 128], sizes = [16, 128], strides = [1, 1]} : vector<16x512xf32> to vector<16x128xf32>
      %30 = arith.maximumf %28, %29 : vector<16x128xf32>
      %31 = vector.extract_strided_slice %27 {offsets = [0, 256], sizes = [16, 128], strides = [1, 1]} : vector<16x512xf32> to vector<16x128xf32>
      %32 = vector.extract_strided_slice %27 {offsets = [0, 384], sizes = [16, 128], strides = [1, 1]} : vector<16x512xf32> to vector<16x128xf32>
      %33 = arith.maximumf %31, %32 : vector<16x128xf32>
      %34 = arith.maximumf %30, %33 : vector<16x128xf32>
      %35 = vector.extract_strided_slice %34 {offsets = [0, 0], sizes = [1, 64], strides = [1, 1]} : vector<16x128xf32> to vector<1x64xf32>
      %36 = arith.truncf %35 : vector<1x64xf32> to vector<1x64xbf16>
      %c0_23 = arith.constant 0 : index
      %c0_24 = arith.constant 0 : index
      %37 = vector.load %arg9[%c0_23, %c0_24] : memref<2x1024xbf16, #tpu.memory_space<vmem>>, vector<1x64xbf16>
      tpu.vector_store %arg9[%c0_23, %c0_24], %36 {strides = array<i32>} : memref<2x1024xbf16, #tpu.memory_space<vmem>>, vector<1x64xbf16>,
      %38 = vector.extract_strided_slice %34 {offsets = [1, 0], sizes = [1, 64], strides = [1, 1]} : vector<16x128xf32> to vector<1x64xf32>
      %39 = arith.truncf %38 : vector<1x64xf32> to vector<1x64xbf16>
      %c0_25 = arith.constant 0 : index
      %c64 = arith.constant 64 : index
      %40 = vector.load %arg9[%c0_25, %c64] : memref<2x1024xbf16, #tpu.memory_space<vmem>>, vector<1x64xbf16>
      tpu.vector_store %arg9[%c0_25, %c64], %39 {strides = array<i32>} : memref<2x1024xbf16, #tpu.memory_space<vmem>>, vector<1x64xbf16>,
      %41 = vector.extract_strided_slice %34 {offsets = [2, 0], sizes = [1, 64], strides = [1, 1]} : vector<16x128xf32> to vector<1x64xf32>
      %42 = arith.truncf %41 : vector<1x64xf32> to vector<1x64xbf16>
      %c0_26 = arith.constant 0 : index
      %c128 = arith.constant 128 : index
      %43 = vector.load %arg9[%c0_26, %c128] : memref<2x1024xbf16, #tpu.memory_space<vmem>>, vector<1x64xbf16>
      tpu.vector_store %arg9[%c0_26, %c128], %42 {strides = array<i32>} : memref<2x1024xbf16, #tpu.memory_space<vmem>>, vector<1x64xbf16>,
      %44 = vector.extract_strided_slice %34 {offsets = [3, 0], sizes = [1, 64], strides = [1, 1]} : vector<16x128xf32> to vector<1x64xf32>
      %45 = arith.truncf %44 : vector<1x64xf32> to vector<1x64xbf16>
      %c0_27 = arith.constant 0 : index
      %c192 = arith.constant 192 : index
      %46 = vector.load %arg9[%c0_27, %c192] : memref<2x1024xbf16, #tpu.memory_space<vmem>>, vector<1x64xbf16>
      tpu.vector_store %arg9[%c0_27, %c192], %45 {strides = array<i32>} : memref<2x1024xbf16, #tpu.memory_space<vmem>>, vector<1x64xbf16>,
      %47 = vector.extract_strided_slice %34 {offsets = [4, 0], sizes = [1, 64], strides = [1, 1]} : vector<16x128xf32> to vector<1x64xf32>
      %48 = arith.truncf %47 : vector<1x64xf32> to vector<1x64xbf16>
      %c0_28 = arith.constant 0 : index
      %c256 = arith.constant 256 : index
      %49 = vector.load %arg9[%c0_28, %c256] : memref<2x1024xbf16, #tpu.memory_space<vmem>>, vector<1x64xbf16>
      tpu.vector_store %arg9[%c0_28, %c256], %48 {strides = array<i32>} : memref<2x1024xbf16, #tpu.memory_space<vmem>>, vector<1x64xbf16>,
      %50 = vector.extract_strided_slice %34 {offsets = [5, 0], sizes = [1, 64], strides = [1, 1]} : vector<16x128xf32> to vector<1x64xf32>
      %51 = arith.truncf %50 : vector<1x64xf32> to vector<1x64xbf16>
      %c0_29 = arith.constant 0 : index
      %c320 = arith.constant 320 : index
      %52 = vector.load %arg9[%c0_29, %c320] : memref<2x1024xbf16, #tpu.memory_space<vmem>>, vector<1x64xbf16>
      tpu.vector_store %arg9[%c0_29, %c320], %51 {strides = array<i32>} : memref<2x1024xbf16, #tpu.memory_space<vmem>>, vector<1x64xbf16>,
      %53 = vector.extract_strided_slice %34 {offsets = [6, 0], sizes = [1, 64], strides = [1, 1]} : vector<16x128xf32> to vector<1x64xf32>
      %54 = arith.truncf %53 : vector<1x64xf32> to vector<1x64xbf16>
      %c0_30 = arith.constant 0 : index
      %c384 = arith.constant 384 : index
      %55 = vector.load %arg9[%c0_30, %c384] : memref<2x1024xbf16, #tpu.memory_space<vmem>>, vector<1x64xbf16>
      tpu.vector_store %arg9[%c0_30, %c384], %54 {strides = array<i32>} : memref<2x1024xbf16, #tpu.memory_space<vmem>>, vector<1x64xbf16>,
      %56 = vector.extract_strided_slice %34 {offsets = [7, 0], sizes = [1, 64], strides = [1, 1]} : vector<16x128xf32> to vector<1x64xf32>
      %57 = arith.truncf %56 : vector<1x64xf32> to vector<1x64xbf16>
      %c0_31 = arith.constant 0 : index
      %c448 = arith.constant 448 : index
      %58 = vector.load %arg9[%c0_31, %c448] : memref<2x1024xbf16, #tpu.memory_space<vmem>>, vector<1x64xbf16>
      tpu.vector_store %arg9[%c0_31, %c448], %57 {strides = array<i32>} : memref<2x1024xbf16, #tpu.memory_space<vmem>>, vector<1x64xbf16>,
      %59 = vector.extract_strided_slice %34 {offsets = [8, 0], sizes = [1, 64], strides = [1, 1]} : vector<16x128xf32> to vector<1x64xf32>
      %60 = arith.truncf %59 : vector<1x64xf32> to vector<1x64xbf16>
      %c0_32 = arith.constant 0 : index
      %c512 = arith.constant 512 : index
      %61 = vector.load %arg9[%c0_32, %c512] : memref<2x1024xbf16, #tpu.memory_space<vmem>>, vector<1x64xbf16>
      tpu.vector_store %arg9[%c0_32, %c512], %60 {strides = array<i32>} : memref<2x1024xbf16, #tpu.memory_space<vmem>>, vector<1x64xbf16>,
      %62 = vector.extract_strided_slice %34 {offsets = [9, 0], sizes = [1, 64], strides = [1, 1]} : vector<16x128xf32> to vector<1x64xf32>
      %63 = arith.truncf %62 : vector<1x64xf32> to vector<1x64xbf16>
      %c0_33 = arith.constant 0 : index
      %c576 = arith.constant 576 : index
      %64 = vector.load %arg9[%c0_33, %c576] : memref<2x1024xbf16, #tpu.memory_space<vmem>>, vector<1x64xbf16>
      tpu.vector_store %arg9[%c0_33, %c576], %63 {strides = array<i32>} : memref<2x1024xbf16, #tpu.memory_space<vmem>>, vector<1x64xbf16>,
      %65 = vector.extract_strided_slice %34 {offsets = [10, 0], sizes = [1, 64], strides = [1, 1]} : vector<16x128xf32> to vector<1x64xf32>
      %66 = arith.truncf %65 : vector<1x64xf32> to vector<1x64xbf16>
      %c0_34 = arith.constant 0 : index
      %c640 = arith.constant 640 : index
      %67 = vector.load %arg9[%c0_34, %c640] : memref<2x1024xbf16, #tpu.memory_space<vmem>>, vector<1x64xbf16>
      tpu.vector_store %arg9[%c0_34, %c640], %66 {strides = array<i32>} : memref<2x1024xbf16, #tpu.memory_space<vmem>>, vector<1x64xbf16>,
      %68 = vector.extract_strided_slice %34 {offsets = [11, 0], sizes = [1, 64], strides = [1, 1]} : vector<16x128xf32> to vector<1x64xf32>
      %69 = arith.truncf %68 : vector<1x64xf32> to vector<1x64xbf16>
      %c0_35 = arith.constant 0 : index
      %c704 = arith.constant 704 : index
      %70 = vector.load %arg9[%c0_35, %c704] : memref<2x1024xbf16, #tpu.memory_space<vmem>>, vector<1x64xbf16>
      tpu.vector_store %arg9[%c0_35, %c704], %69 {strides = array<i32>} : memref<2x1024xbf16, #tpu.memory_space<vmem>>, vector<1x64xbf16>,
      %71 = vector.extract_strided_slice %34 {offsets = [12, 0], sizes = [1, 64], strides = [1, 1]} : vector<16x128xf32> to vector<1x64xf32>
      %72 = arith.truncf %71 : vector<1x64xf32> to vector<1x64xbf16>
      %c0_36 = arith.constant 0 : index
      %c768 = arith.constant 768 : index
      %73 = vector.load %arg9[%c0_36, %c768] : memref<2x1024xbf16, #tpu.memory_space<vmem>>, vector<1x64xbf16>
      tpu.vector_store %arg9[%c0_36, %c768], %72 {strides = array<i32>} : memref<2x1024xbf16, #tpu.memory_space<vmem>>, vector<1x64xbf16>,
      %74 = vector.extract_strided_slice %34 {offsets = [13, 0], sizes = [1, 64], strides = [1, 1]} : vector<16x128xf32> to vector<1x64xf32>
      %75 = arith.truncf %74 : vector<1x64xf32> to vector<1x64xbf16>
      %c0_37 = arith.constant 0 : index
      %c832 = arith.constant 832 : index
      %76 = vector.load %arg9[%c0_37, %c832] : memref<2x1024xbf16, #tpu.memory_space<vmem>>, vector<1x64xbf16>
      tpu.vector_store %arg9[%c0_37, %c832], %75 {strides = array<i32>} : memref<2x1024xbf16, #tpu.memory_space<vmem>>, vector<1x64xbf16>,
      %77 = vector.extract_strided_slice %34 {offsets = [14, 0], sizes = [1, 64], strides = [1, 1]} : vector<16x128xf32> to vector<1x64xf32>
      %78 = arith.truncf %77 : vector<1x64xf32> to vector<1x64xbf16>
      %c0_38 = arith.constant 0 : index
      %c896 = arith.constant 896 : index
      %79 = vector.load %arg9[%c0_38, %c896] : memref<2x1024xbf16, #tpu.memory_space<vmem>>, vector<1x64xbf16>
      tpu.vector_store %arg9[%c0_38, %c896], %78 {strides = array<i32>} : memref<2x1024xbf16, #tpu.memory_space<vmem>>, vector<1x64xbf16>,
      %80 = vector.extract_strided_slice %34 {offsets = [15, 0], sizes = [1, 64], strides = [1, 1]} : vector<16x128xf32> to vector<1x64xf32>
      %81 = arith.truncf %80 : vector<1x64xf32> to vector<1x64xbf16>
      %c0_39 = arith.constant 0 : index
      %c960 = arith.constant 960 : index
      %82 = vector.load %arg9[%c0_39, %c960] : memref<2x1024xbf16, #tpu.memory_space<vmem>>, vector<1x64xbf16>
      tpu.vector_store %arg9[%c0_39, %c960], %81 {strides = array<i32>} : memref<2x1024xbf16, #tpu.memory_space<vmem>>, vector<1x64xbf16>,
      %83 = vector.extract_strided_slice %34 {offsets = [0, 64], sizes = [1, 64], strides = [1, 1]} : vector<16x128xf32> to vector<1x64xf32>
      %84 = arith.truncf %83 : vector<1x64xf32> to vector<1x64xbf16>
      %c1 = arith.constant 1 : index
      %c0_40 = arith.constant 0 : index
      %85 = vector.load %arg9[%c1, %c0_40] : memref<2x1024xbf16, #tpu.memory_space<vmem>>, vector<1x64xbf16>
      tpu.vector_store %arg9[%c1, %c0_40], %84 {strides = array<i32>} : memref<2x1024xbf16, #tpu.memory_space<vmem>>, vector<1x64xbf16>,
      %86 = vector.extract_strided_slice %34 {offsets = [1, 64], sizes = [1, 64], strides = [1, 1]} : vector<16x128xf32> to vector<1x64xf32>
      %87 = arith.truncf %86 : vector<1x64xf32> to vector<1x64xbf16>
      %c1_41 = arith.constant 1 : index
      %c64_42 = arith.constant 64 : index
      %88 = vector.load %arg9[%c1_41, %c64_42] : memref<2x1024xbf16, #tpu.memory_space<vmem>>, vector<1x64xbf16>
      tpu.vector_store %arg9[%c1_41, %c64_42], %87 {strides = array<i32>} : memref<2x1024xbf16, #tpu.memory_space<vmem>>, vector<1x64xbf16>,
      %89 = vector.extract_strided_slice %34 {offsets = [2, 64], sizes = [1, 64], strides = [1, 1]} : vector<16x128xf32> to vector<1x64xf32>
      %90 = arith.truncf %89 : vector<1x64xf32> to vector<1x64xbf16>
      %c1_43 = arith.constant 1 : index
      %c128_44 = arith.constant 128 : index
      %91 = vector.load %arg9[%c1_43, %c128_44] : memref<2x1024xbf16, #tpu.memory_space<vmem>>, vector<1x64xbf16>
      tpu.vector_store %arg9[%c1_43, %c128_44], %90 {strides = array<i32>} : memref<2x1024xbf16, #tpu.memory_space<vmem>>, vector<1x64xbf16>,
      %92 = vector.extract_strided_slice %34 {offsets = [3, 64], sizes = [1, 64], strides = [1, 1]} : vector<16x128xf32> to vector<1x64xf32>
      %93 = arith.truncf %92 : vector<1x64xf32> to vector<1x64xbf16>
      %c1_45 = arith.constant 1 : index
      %c192_46 = arith.constant 192 : index
      %94 = vector.load %arg9[%c1_45, %c192_46] : memref<2x1024xbf16, #tpu.memory_space<vmem>>, vector<1x64xbf16>
      tpu.vector_store %arg9[%c1_45, %c192_46], %93 {strides = array<i32>} : memref<2x1024xbf16, #tpu.memory_space<vmem>>, vector<1x64xbf16>,
      %95 = vector.extract_strided_slice %34 {offsets = [4, 64], sizes = [1, 64], strides = [1, 1]} : vector<16x128xf32> to vector<1x64xf32>
      %96 = arith.truncf %95 : vector<1x64xf32> to vector<1x64xbf16>
      %c1_47 = arith.constant 1 : index
      %c256_48 = arith.constant 256 : index
      %97 = vector.load %arg9[%c1_47, %c256_48] : memref<2x1024xbf16, #tpu.memory_space<vmem>>, vector<1x64xbf16>
      tpu.vector_store %arg9[%c1_47, %c256_48], %96 {strides = array<i32>} : memref<2x1024xbf16, #tpu.memory_space<vmem>>, vector<1x64xbf16>,
      %98 = vector.extract_strided_slice %34 {offsets = [5, 64], sizes = [1, 64], strides = [1, 1]} : vector<16x128xf32> to vector<1x64xf32>
      %99 = arith.truncf %98 : vector<1x64xf32> to vector<1x64xbf16>
      %c1_49 = arith.constant 1 : index
      %c320_50 = arith.constant 320 : index
      %100 = vector.load %arg9[%c1_49, %c320_50] : memref<2x1024xbf16, #tpu.memory_space<vmem>>, vector<1x64xbf16>
      tpu.vector_store %arg9[%c1_49, %c320_50], %99 {strides = array<i32>} : memref<2x1024xbf16, #tpu.memory_space<vmem>>, vector<1x64xbf16>,
      %101 = vector.extract_strided_slice %34 {offsets = [6, 64], sizes = [1, 64], strides = [1, 1]} : vector<16x128xf32> to vector<1x64xf32>
      %102 = arith.truncf %101 : vector<1x64xf32> to vector<1x64xbf16>
      %c1_51 = arith.constant 1 : index
      %c384_52 = arith.constant 384 : index
      %103 = vector.load %arg9[%c1_51, %c384_52] : memref<2x1024xbf16, #tpu.memory_space<vmem>>, vector<1x64xbf16>
      tpu.vector_store %arg9[%c1_51, %c384_52], %102 {strides = array<i32>} : memref<2x1024xbf16, #tpu.memory_space<vmem>>, vector<1x64xbf16>,
      %104 = vector.extract_strided_slice %34 {offsets = [7, 64], sizes = [1, 64], strides = [1, 1]} : vector<16x128xf32> to vector<1x64xf32>
      %105 = arith.truncf %104 : vector<1x64xf32> to vector<1x64xbf16>
      %c1_53 = arith.constant 1 : index
      %c448_54 = arith.constant 448 : index
      %106 = vector.load %arg9[%c1_53, %c448_54] : memref<2x1024xbf16, #tpu.memory_space<vmem>>, vector<1x64xbf16>
      tpu.vector_store %arg9[%c1_53, %c448_54], %105 {strides = array<i32>} : memref<2x1024xbf16, #tpu.memory_space<vmem>>, vector<1x64xbf16>,
      %107 = vector.extract_strided_slice %34 {offsets = [8, 64], sizes = [1, 64], strides = [1, 1]} : vector<16x128xf32> to vector<1x64xf32>
      %108 = arith.truncf %107 : vector<1x64xf32> to vector<1x64xbf16>
      %c1_55 = arith.constant 1 : index
      %c512_56 = arith.constant 512 : index
      %109 = vector.load %arg9[%c1_55, %c512_56] : memref<2x1024xbf16, #tpu.memory_space<vmem>>, vector<1x64xbf16>
      tpu.vector_store %arg9[%c1_55, %c512_56], %108 {strides = array<i32>} : memref<2x1024xbf16, #tpu.memory_space<vmem>>, vector<1x64xbf16>,
      %110 = vector.extract_strided_slice %34 {offsets = [9, 64], sizes = [1, 64], strides = [1, 1]} : vector<16x128xf32> to vector<1x64xf32>
      %111 = arith.truncf %110 : vector<1x64xf32> to vector<1x64xbf16>
      %c1_57 = arith.constant 1 : index
      %c576_58 = arith.constant 576 : index
      %112 = vector.load %arg9[%c1_57, %c576_58] : memref<2x1024xbf16, #tpu.memory_space<vmem>>, vector<1x64xbf16>
      tpu.vector_store %arg9[%c1_57, %c576_58], %111 {strides = array<i32>} : memref<2x1024xbf16, #tpu.memory_space<vmem>>, vector<1x64xbf16>,
      %113 = vector.extract_strided_slice %34 {offsets = [10, 64], sizes = [1, 64], strides = [1, 1]} : vector<16x128xf32> to vector<1x64xf32>
      %114 = arith.truncf %113 : vector<1x64xf32> to vector<1x64xbf16>
      %c1_59 = arith.constant 1 : index
      %c640_60 = arith.constant 640 : index
      %115 = vector.load %arg9[%c1_59, %c640_60] : memref<2x1024xbf16, #tpu.memory_space<vmem>>, vector<1x64xbf16>
      tpu.vector_store %arg9[%c1_59, %c640_60], %114 {strides = array<i32>} : memref<2x1024xbf16, #tpu.memory_space<vmem>>, vector<1x64xbf16>,
      %116 = vector.extract_strided_slice %34 {offsets = [11, 64], sizes = [1, 64], strides = [1, 1]} : vector<16x128xf32> to vector<1x64xf32>
      %117 = arith.truncf %116 : vector<1x64xf32> to vector<1x64xbf16>
      %c1_61 = arith.constant 1 : index
      %c704_62 = arith.constant 704 : index
      %118 = vector.load %arg9[%c1_61, %c704_62] : memref<2x1024xbf16, #tpu.memory_space<vmem>>, vector<1x64xbf16>
      tpu.vector_store %arg9[%c1_61, %c704_62], %117 {strides = array<i32>} : memref<2x1024xbf16, #tpu.memory_space<vmem>>, vector<1x64xbf16>,
      %119 = vector.extract_strided_slice %34 {offsets = [12, 64], sizes = [1, 64], strides = [1, 1]} : vector<16x128xf32> to vector<1x64xf32>
      %120 = arith.truncf %119 : vector<1x64xf32> to vector<1x64xbf16>
      %c1_63 = arith.constant 1 : index
      %c768_64 = arith.constant 768 : index
      %121 = vector.load %arg9[%c1_63, %c768_64] : memref<2x1024xbf16, #tpu.memory_space<vmem>>, vector<1x64xbf16>
      tpu.vector_store %arg9[%c1_63, %c768_64], %120 {strides = array<i32>} : memref<2x1024xbf16, #tpu.memory_space<vmem>>, vector<1x64xbf16>,
      %122 = vector.extract_strided_slice %34 {offsets = [13, 64], sizes = [1, 64], strides = [1, 1]} : vector<16x128xf32> to vector<1x64xf32>
      %123 = arith.truncf %122 : vector<1x64xf32> to vector<1x64xbf16>
      %c1_65 = arith.constant 1 : index
      %c832_66 = arith.constant 832 : index
      %124 = vector.load %arg9[%c1_65, %c832_66] : memref<2x1024xbf16, #tpu.memory_space<vmem>>, vector<1x64xbf16>
      tpu.vector_store %arg9[%c1_65, %c832_66], %123 {strides = array<i32>} : memref<2x1024xbf16, #tpu.memory_space<vmem>>, vector<1x64xbf16>,
      %125 = vector.extract_strided_slice %34 {offsets = [14, 64], sizes = [1, 64], strides = [1, 1]} : vector<16x128xf32> to vector<1x64xf32>
      %126 = arith.truncf %125 : vector<1x64xf32> to vector<1x64xbf16>
      %c1_67 = arith.constant 1 : index
      %c896_68 = arith.constant 896 : index
      %127 = vector.load %arg9[%c1_67, %c896_68] : memref<2x1024xbf16, #tpu.memory_space<vmem>>, vector<1x64xbf16>
      tpu.vector_store %arg9[%c1_67, %c896_68], %126 {strides = array<i32>} : memref<2x1024xbf16, #tpu.memory_space<vmem>>, vector<1x64xbf16>,
      %128 = vector.extract_strided_slice %34 {offsets = [15, 64], sizes = [1, 64], strides = [1, 1]} : vector<16x128xf32> to vector<1x64xf32>
      %129 = arith.truncf %128 : vector<1x64xf32> to vector<1x64xbf16>
      %c1_69 = arith.constant 1 : index
      %c960_70 = arith.constant 960 : index
      %130 = vector.load %arg9[%c1_69, %c960_70] : memref<2x1024xbf16, #tpu.memory_space<vmem>>, vector<1x64xbf16>
      tpu.vector_store %arg9[%c1_69, %c960_70], %129 {strides = array<i32>} : memref<2x1024xbf16, #tpu.memory_space<vmem>>, vector<1x64xbf16>,
      %cst_71 = arith.constant 0.000000e+00 : f32
      %131 = vector.broadcast %cst_71 : f32 to vector<2x7xf32>
      %c0_72 = arith.constant 0 : index
      %c0_73 = arith.constant 0 : index
      %132 = vector.load %arg10[%c0_72, %c0_73] : memref<2x7xf32, #tpu.memory_space<vmem>>, vector<2x7xf32>
      tpu.vector_store %arg10[%c0_72, %c0_73], %131 {strides = array<i32>} : memref<2x7xf32, #tpu.memory_space<vmem>>, vector<2x7xf32>,
    } else {
    }
    %c0 = arith.constant 0 : index
    %c0_1 = arith.constant 0 : index
    %3 = vector.load %arg9[%c0, %c0_1] : memref<2x1024xbf16, #tpu.memory_space<vmem>>, vector<2x1024xbf16>
    %c0_2 = arith.constant 0 : index
    %c0_3 = arith.constant 0 : index
    %4 = vector.load %arg4[%c0_2, %c0_3] : memref<1024x256xbf16, #tpu.memory_space<vmem>>, vector<1024x256xbf16>
    %cst = arith.constant dense<0.000000e+00> : vector<2x256xf32>
    %5 = tpu.matmul %3, %4, %cst {dimension_numbers = #tpu.dot_dimension_numbers<[1], [0], [0], [1], [0, 0, 1, 1], [], []>} : vector<2x1024xbf16>, vector<1024x256xbf16>, vector<2x256xf32> -> vector<2x256xf32>
    %c0_4 = arith.constant 0 : index
    %c0_5 = arith.constant 0 : index
    %6 = vector.load %arg5[%c0_4, %c0_5] : memref<1x256xf32, #tpu.memory_space<vmem>>, vector<1x256xf32>
    %7 = vector.broadcast %6 : vector<1x256xf32> to vector<2x256xf32>
    %8 = arith.addf %5, %7 : vector<2x256xf32>
    %cst_6 = arith.constant 0.000000e+00 : f32
    %9 = vector.broadcast %cst_6 : f32 to vector<2x256xf32>
    %10 = arith.maximumf %8, %9 : vector<2x256xf32>
    %c0_7 = arith.constant 0 : index
    %c0_8 = arith.constant 0 : index
    %11 = vector.load %arg10[%c0_7, %c0_8] : memref<2x7xf32, #tpu.memory_space<vmem>>, vector<2x7xf32>
    %12 = arith.truncf %10 : vector<2x256xf32> to vector<2x256xbf16>
    %c0_9 = arith.constant 0 : index
    %c0_10 = arith.constant 0 : index
    %13 = vector.load %arg6[%c0_9, %c0_10] : memref<256x7xbf16, #tpu.memory_space<vmem>>, vector<256x7xbf16>
    %cst_11 = arith.constant dense<0.000000e+00> : vector<2x7xf32>
    %14 = tpu.matmul %12, %13, %cst_11 {dimension_numbers = #tpu.dot_dimension_numbers<[1], [0], [0], [1], [0, 0, 1, 1], [], []>} : vector<2x256xbf16>, vector<256x7xbf16>, vector<2x7xf32> -> vector<2x7xf32>
    %15 = arith.addf %11, %14 : vector<2x7xf32>
    %c0_12 = arith.constant 0 : index
    %c0_13 = arith.constant 0 : index
    %16 = vector.load %arg10[%c0_12, %c0_13] : memref<2x7xf32, #tpu.memory_space<vmem>>, vector<2x7xf32>
    tpu.vector_store %arg10[%c0_12, %c0_13], %15 {strides = array<i32>} : memref<2x7xf32, #tpu.memory_space<vmem>>, vector<2x7xf32>,
    %c1_i32 = arith.constant 1 : i32
    %17 = arith.cmpi eq, %arg0, %c1_i32 : i32
    %18 = arith.extui %17 : i1 to i32
    %c0_i32_14 = arith.constant 0 : i32
    %19 = arith.cmpi ne, %18, %c0_i32_14 : i32
    scf.if %19 {
      %c0_15 = arith.constant 0 : index
      %c0_16 = arith.constant 0 : index
      %20 = vector.load %arg10[%c0_15, %c0_16] : memref<2x7xf32, #tpu.memory_space<vmem>>, vector<2x7xf32>
      %c0_17 = arith.constant 0 : index
      %c0_18 = arith.constant 0 : index
      %21 = vector.load %arg7[%c0_17, %c0_18] : memref<1x7xf32, #tpu.memory_space<vmem>>, vector<1x7xf32>
      %22 = vector.broadcast %21 : vector<1x7xf32> to vector<2x7xf32>
      %23 = arith.addf %20, %22 : vector<2x7xf32>
      %c0_19 = arith.constant 0 : index
      %c0_20 = arith.constant 0 : index
      %24 = vector.load %arg8[%c0_19, %c0_20] : memref<2x7xf32, #tpu.memory_space<vmem>>, vector<2x7xf32>
      tpu.vector_store %arg8[%c0_19, %c0_20], %23 {strides = array<i32>} : memref<2x7xf32, #tpu.memory_space<vmem>>, vector<2x7xf32>,
    } else {
    }
    return
  }
  func.func @transform_0(%arg0: i32) -> (i32, i32) {
    %c0_i32 = arith.constant 0 : i32
    %c0_i32_0 = arith.constant 0 : i32
    %c0_i32_1 = arith.constant 0 : i32
    return %c0_i32, %c0_i32_0 : i32, i32
  }
  func.func @transform_1(%arg0: i32) -> (i32, i32) {
    %c0_i32 = arith.constant 0 : i32
    %c0_i32_0 = arith.constant 0 : i32
    %c0_i32_1 = arith.constant 0 : i32
    return %c0_i32, %c0_i32_0 : i32, i32
  }
  func.func @transform_2(%arg0: i32) -> (i32, i32) {
    %c0_i32 = arith.constant 0 : i32
    %c0_i32_0 = arith.constant 0 : i32
    %c0_i32_1 = arith.constant 0 : i32
    return %c0_i32, %c0_i32_0 : i32, i32
  }
  func.func @transform_3(%arg0: i32) -> (i32, i32) {
    %c0_i32 = arith.constant 0 : i32
    %c0_i32_0 = arith.constant 0 : i32
    return %c0_i32, %arg0 : i32, i32
  }
  func.func @transform_4(%arg0: i32) -> (i32, i32) {
    %c0_i32 = arith.constant 0 : i32
    %c0_i32_0 = arith.constant 0 : i32
    return %c0_i32, %arg0 : i32, i32
  }
  func.func @transform_5(%arg0: i32) -> (i32, i32) {
    %c0_i32 = arith.constant 0 : i32
    %c0_i32_0 = arith.constant 0 : i32
    return %arg0, %c0_i32 : i32, i32
  }
  func.func @transform_6(%arg0: i32) -> (i32, i32) {
    %c0_i32 = arith.constant 0 : i32
    %c0_i32_0 = arith.constant 0 : i32
    %c0_i32_1 = arith.constant 0 : i32
    return %c0_i32, %c0_i32_0 : i32, i32
  }
  func.func @transform_7(%arg0: i32) -> (i32, i32) {
    %c0_i32 = arith.constant 0 : i32
    %c0_i32_0 = arith.constant 0 : i32
    %c0_i32_1 = arith.constant 0 : i32
    return %c0_i32, %c0_i32_0 : i32, i32
  }
}

</mosaic_0001>

<bundles_post_ra>
// kernel: visuomotor_forward_pallas.1
= control target key start
LH: loop header
LB: loop body
LE: loop exit
PB: predicated region body
PF: predicated region fallthrough
CT: control target
= control target key end

     0   :  { %12 = vsyncpa [#allocation6], 0  ;;  %s3155_s24 = smov 0   ;;  %s3157_s25 = smov 0   ;;  %s3854_s0 = inlined_call_operand.vmem [shape: bf16[32,512], index: 0, kind: input, shape index: {}]   ;;  %s3855_s1 = inlined_call_operand.vmem [shape: bf16[16,32], index: 1, kind: input, shape index: {}]   ;;  %s3856_s2 = inlined_call_operand.vmem [shape: f32[16,1], index: 2, kind: input, shape index: {}]   ;;  %s3857_s3 = inlined_call_operand.vmem [shape: bf16[1024,512], index: 3, kind: input, shape index: {}]   ;;  %s3858_s4 = inlined_call_operand.vmem [shape: f32[1,512], index: 4, kind: input, shape index: {}]   ;;  %s3859_s5 = inlined_call_operand.vmem [shape: bf16[512,7], index: 5, kind: input, shape index: {}]   ;;  %s3860_s6 = inlined_call_operand.vmem [shape: f32[1,7], index: 6, kind: input, shape index: {}]   ;;  %s3861_s7 = inlined_call_operand.hbm [shape: f32[2,7], index: 7, kind: output, shape index: {}]  }
   0x1   :  { %s3159_s26 = smov 0  }
   0x2 LB: > { %s3171_s27 = sadd.s32 4294967295, %s3107_s26   ;;  %s3174_s28 = sadd.s32 1, %s3107_s26   ;;  %s3107_s26 = sphi %s3159_s26, %s3872_s26   ;;  %s3103_s25 = sphi %s3157_s25, %s3871_s25   ;;  %s3099_s24 = sphi %s3155_s24, %s3870_s24  }
   0x3   : > { %s85_s29 = ssub.s32 %s3107_s26, %s3174_s28  ;;  %s88_s30 = sadd.s32 1, %s3103_s25 }
   0x4   : > { %p86_p0 = scmp.eq.s32.totalorder %s85_s29, 0  ;;  %p95_p1 = scmp.ne.s32.totalorder %s3103_s25, %s3099_s24 }
   0x5   : > { %p96_p2 = scmp.eq.s32.totalorder %s3107_s26, 0  ;;  %p2562_p4 = scmp.ge.s32.totalorder %s3107_s26, 2 }
   0x6   : > { %s3183_s8 = scalar_select %p86_p0, %s3103_s25, %s88_s30  }
   0x7   : > { %p97_p3 = por %p96_p2, %p95_p1  ;;  %227 = sbr.rel (%p2562_p4) target bundleno = 82 (0x52), region = 32 }
   0xe   : > { %230 = sbr.rel (!%p97_p3) target bundleno = 82 (0x52), region = 36  ;;  %s232_s9 = sand.u32 (%p97_p3), 1, %s3103_s25  }
   0xf   : > { %s2741_s10 = sshll.u32 (%p97_p3), %s3107_s26, 3  ;;  %s2563_s11 = sshll.u32 (%p97_p3), %s232_s9, 10 }
  0x10   : > { %s3191_s14 = scalar_lea.vmem (%p97_p3), %s3857_s3, %s2741_s10  ;;  %s3196_s15 = scalar_lea.vmem (%p97_p3), [#allocation4], %s2563_s11 }
  0x11   : > { %v519_v0 = vld [vmem:[%s3191_s14] sm:$0xff] (%p97_p3)  ;;  %v521_v1 = vld [vmem:[%s3191_s14 + $0x10] sm:$0xff] (%p97_p3) }
  0x12   : > { %v523_v2 = vld [vmem:[%s3191_s14 + $0x20] sm:$0xff] (%p97_p3)  ;;  %520 = vst [vmem:[%s3196_s15] sm:$0xff] (%p97_p3), %v519_v0  ;;  %522 = vst [vmem:[%s3196_s15 + $0x8] sm:$0xff] (%p97_p3), %v521_v1  ;;  %v525_v3 = vld [vmem:[%s3191_s14 + $0x30] sm:$0xff] (%p97_p3) }
  0x13   : > { %524 = vst [vmem:[%s3196_s15 + $0x10] sm:$0xff] (%p97_p3), %v523_v2  ;;  %v527_v4 = vld [vmem:[%s3191_s14 + $0x40] sm:$0xff] (%p97_p3)  ;;  %v529_v5 = vld [vmem:[%s3191_s14 + $0x50] sm:$0xff] (%p97_p3)  ;;  %526 = vst [vmem:[%s3196_s15 + $0x18] sm:$0xff] (%p97_p3), %v525_v3 }
  0x14   : > { %528 = vst [vmem:[%s3196_s15 + $0x20] sm:$0xff] (%p97_p3), %v527_v4  ;;  %530 = vst [vmem:[%s3196_s15 + $0x28] sm:$0xff] (%p97_p3), %v529_v5  ;;  %v531_v6 = vld [vmem:[%s3191_s14 + $0x60] sm:$0xff] (%p97_p3)  ;;  %v533_v7 = vld [vmem:[%s3191_s14 + $0x70] sm:$0xff] (%p97_p3) }
  0x15   : > { %v535_v8 = vld [vmem:[%s3191_s14 + $0x80] sm:$0xff]  ;;  %532 = vst [vmem:[%s3196_s15 + $0x30] sm:$0xff] %v531_v6  ;;  %534 = vst [vmem:[%s3196_s15 + $0x38] sm:$0xff] %v533_v7  ;;  %v537_v9 = vld [vmem:[%s3191_s14 + $0x90] sm:$0xff] }
  0x16   : > { %536 = vst [vmem:[%s3196_s15 + $0x40] sm:$0xff] %v535_v8  ;;  %v539_v10 = vld [vmem:[%s3191_s14 + $0xa0] sm:$0xff]  ;;  %v541_v11 = vld [vmem:[%s3191_s14 + $0xb0] sm:$0xff]  ;;  %538 = vst [vmem:[%s3196_s15 + $0x48] sm:$0xff] %v537_v9 }
  0x17   : > { %540 = vst [vmem:[%s3196_s15 + $0x50] sm:$0xff] %v539_v10  ;;  %542 = vst [vmem:[%s3196_s15 + $0x58] sm:$0xff] %v541_v11  ;;  %v543_v12 = vld [vmem:[%s3191_s14 + $0xc0] sm:$0xff]  ;;  %v545_v13 = vld [vmem:[%s3191_s14 + $0xd0] sm:$0xff] }
  0x18   : > { %v547_v14 = vld [vmem:[%s3191_s14 + $0xe0] sm:$0xff]  ;;  %544 = vst [vmem:[%s3196_s15 + $0x60] sm:$0xff] %v543_v12  ;;  %546 = vst [vmem:[%s3196_s15 + $0x68] sm:$0xff] %v545_v13  ;;  %v549_v15 = vld [vmem:[%s3191_s14 + $0xf0] sm:$0xff] }
  0x19   : > { %548 = vst [vmem:[%s3196_s15 + $0x70] sm:$0xff] %v547_v14  ;;  %v551_v16 = vld [vmem:[%s3191_s14 + $0x100] sm:$0xff]  ;;  %v553_v17 = vld [vmem:[%s3191_s14 + $0x110] sm:$0xff]  ;;  %550 = vst [vmem:[%s3196_s15 + $0x78] sm:$0xff] %v549_v15 }
  0x1a   : > { %552 = vst [vmem:[%s3196_s15 + $0x80] sm:$0xff] %v551_v16  ;;  %554 = vst [vmem:[%s3196_s15 + $0x88] sm:$0xff] %v553_v17  ;;  %v555_v18 = vld [vmem:[%s3191_s14 + $0x120] sm:$0xff]  ;;  %v557_v19 = vld [vmem:[%s3191_s14 + $0x130] sm:$0xff] }
  0x1b   : > { %v559_v20 = vld [vmem:[%s3191_s14 + $0x140] sm:$0xff]  ;;  %556 = vst [vmem:[%s3196_s15 + $0x90] sm:$0xff] %v555_v18  ;;  %558 = vst [vmem:[%s3196_s15 + $0x98] sm:$0xff] %v557_v19  ;;  %v561_v21 = vld [vmem:[%s3191_s14 + $0x150] sm:$0xff] }
  0x1c   : > { %560 = vst [vmem:[%s3196_s15 + $0xa0] sm:$0xff] %v559_v20  ;;  %v563_v22 = vld [vmem:[%s3191_s14 + $0x160] sm:$0xff]  ;;  %v565_v23 = vld [vmem:[%s3191_s14 + $0x170] sm:$0xff]  ;;  %562 = vst [vmem:[%s3196_s15 + $0xa8] sm:$0xff] %v561_v21 }
  0x1d   : > { %564 = vst [vmem:[%s3196_s15 + $0xb0] sm:$0xff] %v563_v22  ;;  %566 = vst [vmem:[%s3196_s15 + $0xb8] sm:$0xff] %v565_v23  ;;  %v567_v24 = vld [vmem:[%s3191_s14 + $0x180] sm:$0xff]  ;;  %v569_v25 = vld [vmem:[%s3191_s14 + $0x190] sm:$0xff] }
  0x1e   : > { %v571_v26 = vld [vmem:[%s3191_s14 + $0x1a0] sm:$0xff]  ;;  %568 = vst [vmem:[%s3196_s15 + $0xc0] sm:$0xff] %v567_v24  ;;  %570 = vst [vmem:[%s3196_s15 + $0xc8] sm:$0xff] %v569_v25  ;;  %v573_v27 = vld [vmem:[%s3191_s14 + $0x1b0] sm:$0xff] }
  0x1f   : > { %572 = vst [vmem:[%s3196_s15 + $0xd0] sm:$0xff] %v571_v26  ;;  %v575_v28 = vld [vmem:[%s3191_s14 + $0x1c0] sm:$0xff]  ;;  %v577_v29 = vld [vmem:[%s3191_s14 + $0x1d0] sm:$0xff]  ;;  %574 = vst [vmem:[%s3196_s15 + $0xd8] sm:$0xff] %v573_v27 }
  0x20   : > { %576 = vst [vmem:[%s3196_s15 + $0xe0] sm:$0xff] %v575_v28  ;;  %578 = vst [vmem:[%s3196_s15 + $0xe8] sm:$0xff] %v577_v29  ;;  %v579_v30 = vld [vmem:[%s3191_s14 + $0x1e0] sm:$0xff]  ;;  %v581_v31 = vld [vmem:[%s3191_s14 + $0x1f0] sm:$0xff] }
  0x21   : > { %v583_v32 = vld [vmem:[%s3191_s14 + $0x200] sm:$0xff]  ;;  %580 = vst [vmem:[%s3196_s15 + $0xf0] sm:$0xff] %v579_v30  ;;  %582 = vst [vmem:[%s3196_s15 + $0xf8] sm:$0xff] %v581_v31  ;;  %v585_v33 = vld [vmem:[%s3191_s14 + $0x210] sm:$0xff] }
  0x22   : > { %584 = vst [vmem:[%s3196_s15 + $0x100] sm:$0xff] %v583_v32  ;;  %v587_v34 = vld [vmem:[%s3191_s14 + $0x220] sm:$0xff]  ;;  %v589_v35 = vld [vmem:[%s3191_s14 + $0x230] sm:$0xff]  ;;  %586 = vst [vmem:[%s3196_s15 + $0x108] sm:$0xff] %v585_v33 }
  0x23   : > { %588 = vst [vmem:[%s3196_s15 + $0x110] sm:$0xff] %v587_v34  ;;  %590 = vst [vmem:[%s3196_s15 + $0x118] sm:$0xff] %v589_v35  ;;  %v591_v36 = vld [vmem:[%s3191_s14 + $0x240] sm:$0xff]  ;;  %v593_v37 = vld [vmem:[%s3191_s14 + $0x250] sm:$0xff] }
  0x24   : > { %v595_v38 = vld [vmem:[%s3191_s14 + $0x260] sm:$0xff]  ;;  %592 = vst [vmem:[%s3196_s15 + $0x120] sm:$0xff] %v591_v36  ;;  %594 = vst [vmem:[%s3196_s15 + $0x128] sm:$0xff] %v593_v37  ;;  %v597_v39 = vld [vmem:[%s3191_s14 + $0x270] sm:$0xff] }
  0x25   : > { %596 = vst [vmem:[%s3196_s15 + $0x130] sm:$0xff] %v595_v38  ;;  %v599_v40 = vld [vmem:[%s3191_s14 + $0x280] sm:$0xff]  ;;  %v601_v41 = vld [vmem:[%s3191_s14 + $0x290] sm:$0xff]  ;;  %598 = vst [vmem:[%s3196_s15 + $0x138] sm:$0xff] %v597_v39 }
  0x26   : > { %600 = vst [vmem:[%s3196_s15 + $0x140] sm:$0xff] %v599_v40  ;;  %602 = vst [vmem:[%s3196_s15 + $0x148] sm:$0xff] %v601_v41  ;;  %v603_v42 = vld [vmem:[%s3191_s14 + $0x2a0] sm:$0xff]  ;;  %v605_v43 = vld [vmem:[%s3191_s14 + $0x2b0] sm:$0xff] }
  0x27   : > { %v607_v44 = vld [vmem:[%s3191_s14 + $0x2c0] sm:$0xff]  ;;  %604 = vst [vmem:[%s3196_s15 + $0x150] sm:$0xff] %v603_v42  ;;  %606 = vst [vmem:[%s3196_s15 + $0x158] sm:$0xff] %v605_v43  ;;  %v609_v45 = vld [vmem:[%s3191_s14 + $0x2d0] sm:$0xff] }
  0x28   : > { %608 = vst [vmem:[%s3196_s15 + $0x160] sm:$0xff] %v607_v44  ;;  %v611_v46 = vld [vmem:[%s3191_s14 + $0x2e0] sm:$0xff]  ;;  %v613_v47 = vld [vmem:[%s3191_s14 + $0x2f0] sm:$0xff]  ;;  %610 = vst [vmem:[%s3196_s15 + $0x168] sm:$0xff] %v609_v45 }
  0x29   : > { %612 = vst [vmem:[%s3196_s15 + $0x170] sm:$0xff] %v611_v46  ;;  %614 = vst [vmem:[%s3196_s15 + $0x178] sm:$0xff] %v613_v47  ;;  %v615_v48 = vld [vmem:[%s3191_s14 + $0x300] sm:$0xff]  ;;  %v617_v49 = vld [vmem:[%s3191_s14 + $0x310] sm:$0xff] }
  0x2a   : > { %v619_v50 = vld [vmem:[%s3191_s14 + $0x320] sm:$0xff]  ;;  %616 = vst [vmem:[%s3196_s15 + $0x180] sm:$0xff] %v615_v48  ;;  %618 = vst [vmem:[%s3196_s15 + $0x188] sm:$0xff] %v617_v49  ;;  %v621_v51 = vld [vmem:[%s3191_s14 + $0x330] sm:$0xff] }
  0x2b   : > { %620 = vst [vmem:[%s3196_s15 + $0x190] sm:$0xff] %v619_v50  ;;  %v623_v52 = vld [vmem:[%s3191_s14 + $0x340] sm:$0xff]  ;;  %v625_v53 = vld [vmem:[%s3191_s14 + $0x350] sm:$0xff]  ;;  %622 = vst [vmem:[%s3196_s15 + $0x198] sm:$0xff] %v621_v51 }
  0x2c   : > { %624 = vst [vmem:[%s3196_s15 + $0x1a0] sm:$0xff] %v623_v52  ;;  %626 = vst [vmem:[%s3196_s15 + $0x1a8] sm:$0xff] %v625_v53  ;;  %v627_v54 = vld [vmem:[%s3191_s14 + $0x360] sm:$0xff]  ;;  %v629_v55 = vld [vmem:[%s3191_s14 + $0x370] sm:$0xff] }
  0x2d   : > { %v631_v56 = vld [vmem:[%s3191_s14 + $0x380] sm:$0xff]  ;;  %628 = vst [vmem:[%s3196_s15 + $0x1b0] sm:$0xff] %v627_v54  ;;  %630 = vst [vmem:[%s3196_s15 + $0x1b8] sm:$0xff] %v629_v55  ;;  %v633_v57 = vld [vmem:[%s3191_s14 + $0x390] sm:$0xff] }
  0x2e   : > { %632 = vst [vmem:[%s3196_s15 + $0x1c0] sm:$0xff] %v631_v56  ;;  %v635_v58 = vld [vmem:[%s3191_s14 + $0x3a0] sm:$0xff]  ;;  %v637_v59 = vld [vmem:[%s3191_s14 + $0x3b0] sm:$0xff]  ;;  %634 = vst [vmem:[%s3196_s15 + $0x1c8] sm:$0xff] %v633_v57 }
  0x2f   : > { %636 = vst [vmem:[%s3196_s15 + $0x1d0] sm:$0xff] %v635_v58  ;;  %638 = vst [vmem:[%s3196_s15 + $0x1d8] sm:$0xff] %v637_v59  ;;  %v639_v60 = vld [vmem:[%s3191_s14 + $0x3c0] sm:$0xff]  ;;  %v641_v61 = vld [vmem:[%s3191_s14 + $0x3d0] sm:$0xff] }
  0x30   : > { %v643_v62 = vld [vmem:[%s3191_s14 + $0x3e0] sm:$0xff]  ;;  %640 = vst [vmem:[%s3196_s15 + $0x1e0] sm:$0xff] %v639_v60  ;;  %642 = vst [vmem:[%s3196_s15 + $0x1e8] sm:$0xff] %v641_v61  ;;  %v645_v63 = vld [vmem:[%s3191_s14 + $0x3f0] sm:$0xff] }
  0x31   : > { %644 = vst [vmem:[%s3196_s15 + $0x1f0] sm:$0xff] %v643_v62  ;;  %v647_v0 = vld [vmem:[%s3191_s14 + $0x400] sm:$0xff]  ;;  %v649_v1 = vld [vmem:[%s3191_s14 + $0x410] sm:$0xff]  ;;  %646 = vst [vmem:[%s3196_s15 + $0x1f8] sm:$0xff] %v645_v63 }
  0x32   : > { %648 = vst [vmem:[%s3196_s15 + $0x200] sm:$0xff] %v647_v0  ;;  %650 = vst [vmem:[%s3196_s15 + $0x208] sm:$0xff] %v649_v1  ;;  %v651_v2 = vld [vmem:[%s3191_s14 + $0x420] sm:$0xff]  ;;  %v653_v3 = vld [vmem:[%s3191_s14 + $0x430] sm:$0xff] }
  0x33   : > { %v655_v4 = vld [vmem:[%s3191_s14 + $0x440] sm:$0xff]  ;;  %652 = vst [vmem:[%s3196_s15 + $0x210] sm:$0xff] %v651_v2  ;;  %654 = vst [vmem:[%s3196_s15 + $0x218] sm:$0xff] %v653_v3  ;;  %v657_v5 = vld [vmem:[%s3191_s14 + $0x450] sm:$0xff] }
  0x34   : > { %656 = vst [vmem:[%s3196_s15 + $0x220] sm:$0xff] %v655_v4  ;;  %v659_v6 = vld [vmem:[%s3191_s14 + $0x460] sm:$0xff]  ;;  %v661_v7 = vld [vmem:[%s3191_s14 + $0x470] sm:$0xff]  ;;  %658 = vst [vmem:[%s3196_s15 + $0x228] sm:$0xff] %v657_v5 }
  0x35   : > { %660 = vst [vmem:[%s3196_s15 + $0x230] sm:$0xff] %v659_v6  ;;  %662 = vst [vmem:[%s3196_s15 + $0x238] sm:$0xff] %v661_v7  ;;  %v663_v8 = vld [vmem:[%s3191_s14 + $0x480] sm:$0xff]  ;;  %v665_v9 = vld [vmem:[%s3191_s14 + $0x490] sm:$0xff] }
  0x36   : > { %v667_v10 = vld [vmem:[%s3191_s14 + $0x4a0] sm:$0xff]  ;;  %664 = vst [vmem:[%s3196_s15 + $0x240] sm:$0xff] %v663_v8  ;;  %666 = vst [vmem:[%s3196_s15 + $0x248] sm:$0xff] %v665_v9  ;;  %v669_v11 = vld [vmem:[%s3191_s14 + $0x4b0] sm:$0xff] }
  0x37   : > { %668 = vst [vmem:[%s3196_s15 + $0x250] sm:$0xff] %v667_v10  ;;  %v671_v12 = vld [vmem:[%s3191_s14 + $0x4c0] sm:$0xff]  ;;  %v673_v13 = vld [vmem:[%s3191_s14 + $0x4d0] sm:$0xff]  ;;  %670 = vst [vmem:[%s3196_s15 + $0x258] sm:$0xff] %v669_v11 }
  0x38   : > { %672 = vst [vmem:[%s3196_s15 + $0x260] sm:$0xff] %v671_v12  ;;  %674 = vst [vmem:[%s3196_s15 + $0x268] sm:$0xff] %v673_v13  ;;  %v675_v14 = vld [vmem:[%s3191_s14 + $0x4e0] sm:$0xff]  ;;  %v677_v15 = vld [vmem:[%s3191_s14 + $0x4f0] sm:$0xff] }
  0x39   : > { %v679_v16 = vld [vmem:[%s3191_s14 + $0x500] sm:$0xff]  ;;  %676 = vst [vmem:[%s3196_s15 + $0x270] sm:$0xff] %v675_v14  ;;  %678 = vst [vmem:[%s3196_s15 + $0x278] sm:$0xff] %v677_v15  ;;  %v681_v17 = vld [vmem:[%s3191_s14 + $0x510] sm:$0xff] }
  0x3a   : > { %680 = vst [vmem:[%s3196_s15 + $0x280] sm:$0xff] %v679_v16  ;;  %v683_v18 = vld [vmem:[%s3191_s14 + $0x520] sm:$0xff]  ;;  %v685_v19 = vld [vmem:[%s3191_s14 + $0x530] sm:$0xff]  ;;  %682 = vst [vmem:[%s3196_s15 + $0x288] sm:$0xff] %v681_v17 }
  0x3b   : > { %684 = vst [vmem:[%s3196_s15 + $0x290] sm:$0xff] %v683_v18  ;;  %686 = vst [vmem:[%s3196_s15 + $0x298] sm:$0xff] %v685_v19  ;;  %v687_v20 = vld [vmem:[%s3191_s14 + $0x540] sm:$0xff]  ;;  %v689_v21 = vld [vmem:[%s3191_s14 + $0x550] sm:$0xff] }
  0x3c   : > { %v691_v22 = vld [vmem:[%s3191_s14 + $0x560] sm:$0xff]  ;;  %688 = vst [vmem:[%s3196_s15 + $0x2a0] sm:$0xff] %v687_v20  ;;  %690 = vst [vmem:[%s3196_s15 + $0x2a8] sm:$0xff] %v689_v21  ;;  %v693_v23 = vld [vmem:[%s3191_s14 + $0x570] sm:$0xff] }
  0x3d   : > { %692 = vst [vmem:[%s3196_s15 + $0x2b0] sm:$0xff] %v691_v22  ;;  %v695_v24 = vld [vmem:[%s3191_s14 + $0x580] sm:$0xff]  ;;  %v697_v25 = vld [vmem:[%s3191_s14 + $0x590] sm:$0xff]  ;;  %694 = vst [vmem:[%s3196_s15 + $0x2b8] sm:$0xff] %v693_v23 }
  0x3e   : > { %696 = vst [vmem:[%s3196_s15 + $0x2c0] sm:$0xff] %v695_v24  ;;  %698 = vst [vmem:[%s3196_s15 + $0x2c8] sm:$0xff] %v697_v25  ;;  %v699_v26 = vld [vmem:[%s3191_s14 + $0x5a0] sm:$0xff]  ;;  %v701_v27 = vld [vmem:[%s3191_s14 + $0x5b0] sm:$0xff] }
  0x3f   : > { %v703_v28 = vld [vmem:[%s3191_s14 + $0x5c0] sm:$0xff]  ;;  %700 = vst [vmem:[%s3196_s15 + $0x2d0] sm:$0xff] %v699_v26  ;;  %702 = vst [vmem:[%s3196_s15 + $0x2d8] sm:$0xff] %v701_v27  ;;  %v705_v29 = vld [vmem:[%s3191_s14 + $0x5d0] sm:$0xff] }
  0x40   : > { %704 = vst [vmem:[%s3196_s15 + $0x2e0] sm:$0xff] %v703_v28  ;;  %v707_v30 = vld [vmem:[%s3191_s14 + $0x5e0] sm:$0xff]  ;;  %v709_v31 = vld [vmem:[%s3191_s14 + $0x5f0] sm:$0xff]  ;;  %706 = vst [vmem:[%s3196_s15 + $0x2e8] sm:$0xff] %v705_v29 }
  0x41   : > { %708 = vst [vmem:[%s3196_s15 + $0x2f0] sm:$0xff] %v707_v30  ;;  %710 = vst [vmem:[%s3196_s15 + $0x2f8] sm:$0xff] %v709_v31  ;;  %v711_v32 = vld [vmem:[%s3191_s14 + $0x600] sm:$0xff]  ;;  %v713_v33 = vld [vmem:[%s3191_s14 + $0x610] sm:$0xff] }
  0x42   : > { %v715_v34 = vld [vmem:[%s3191_s14 + $0x620] sm:$0xff]  ;;  %712 = vst [vmem:[%s3196_s15 + $0x300] sm:$0xff] %v711_v32  ;;  %714 = vst [vmem:[%s3196_s15 + $0x308] sm:$0xff] %v713_v33  ;;  %v717_v35 = vld [vmem:[%s3191_s14 + $0x630] sm:$0xff] }
  0x43   : > { %716 = vst [vmem:[%s3196_s15 + $0x310] sm:$0xff] %v715_v34  ;;  %v719_v36 = vld [vmem:[%s3191_s14 + $0x640] sm:$0xff]  ;;  %v721_v37 = vld [vmem:[%s3191_s14 + $0x650] sm:$0xff]  ;;  %718 = vst [vmem:[%s3196_s15 + $0x318] sm:$0xff] %v717_v35 }
  0x44   : > { %720 = vst [vmem:[%s3196_s15 + $0x320] sm:$0xff] %v719_v36  ;;  %722 = vst [vmem:[%s3196_s15 + $0x328] sm:$0xff] %v721_v37  ;;  %v723_v38 = vld [vmem:[%s3191_s14 + $0x660] sm:$0xff]  ;;  %v725_v39 = vld [vmem:[%s3191_s14 + $0x670] sm:$0xff] }
  0x45   : > { %v727_v40 = vld [vmem:[%s3191_s14 + $0x680] sm:$0xff]  ;;  %724 = vst [vmem:[%s3196_s15 + $0x330] sm:$0xff] %v723_v38  ;;  %726 = vst [vmem:[%s3196_s15 + $0x338] sm:$0xff] %v725_v39  ;;  %v729_v41 = vld [vmem:[%s3191_s14 + $0x690] sm:$0xff] }
  0x46   : > { %728 = vst [vmem:[%s3196_s15 + $0x340] sm:$0xff] %v727_v40  ;;  %v731_v42 = vld [vmem:[%s3191_s14 + $0x6a0] sm:$0xff]  ;;  %v733_v43 = vld [vmem:[%s3191_s14 + $0x6b0] sm:$0xff]  ;;  %730 = vst [vmem:[%s3196_s15 + $0x348] sm:$0xff] %v729_v41 }
  0x47   : > { %732 = vst [vmem:[%s3196_s15 + $0x350] sm:$0xff] %v731_v42  ;;  %734 = vst [vmem:[%s3196_s15 + $0x358] sm:$0xff] %v733_v43  ;;  %v735_v44 = vld [vmem:[%s3191_s14 + $0x6c0] sm:$0xff]  ;;  %v737_v45 = vld [vmem:[%s3191_s14 + $0x6d0] sm:$0xff] }
  0x48   : > { %v739_v46 = vld [vmem:[%s3191_s14 + $0x6e0] sm:$0xff]  ;;  %736 = vst [vmem:[%s3196_s15 + $0x360] sm:$0xff] %v735_v44  ;;  %738 = vst [vmem:[%s3196_s15 + $0x368] sm:$0xff] %v737_v45  ;;  %v741_v47 = vld [vmem:[%s3191_s14 + $0x6f0] sm:$0xff] }
  0x49   : > { %740 = vst [vmem:[%s3196_s15 + $0x370] sm:$0xff] %v739_v46  ;;  %v743_v48 = vld [vmem:[%s3191_s14 + $0x700] sm:$0xff]  ;;  %v745_v49 = vld [vmem:[%s3191_s14 + $0x710] sm:$0xff]  ;;  %742 = vst [vmem:[%s3196_s15 + $0x378] sm:$0xff] %v741_v47 }
  0x4a   : > { %744 = vst [vmem:[%s3196_s15 + $0x380] sm:$0xff] %v743_v48  ;;  %746 = vst [vmem:[%s3196_s15 + $0x388] sm:$0xff] %v745_v49  ;;  %v747_v50 = vld [vmem:[%s3191_s14 + $0x720] sm:$0xff]  ;;  %v749_v51 = vld [vmem:[%s3191_s14 + $0x730] sm:$0xff] }
  0x4b   : > { %v751_v52 = vld [vmem:[%s3191_s14 + $0x740] sm:$0xff]  ;;  %748 = vst [vmem:[%s3196_s15 + $0x390] sm:$0xff] %v747_v50  ;;  %750 = vst [vmem:[%s3196_s15 + $0x398] sm:$0xff] %v749_v51  ;;  %v753_v53 = vld [vmem:[%s3191_s14 + $0x750] sm:$0xff] }
  0x4c   : > { %752 = vst [vmem:[%s3196_s15 + $0x3a0] sm:$0xff] %v751_v52  ;;  %v755_v54 = vld [vmem:[%s3191_s14 + $0x760] sm:$0xff]  ;;  %v757_v55 = vld [vmem:[%s3191_s14 + $0x770] sm:$0xff]  ;;  %754 = vst [vmem:[%s3196_s15 + $0x3a8] sm:$0xff] %v753_v53 }
  0x4d   : > { %756 = vst [vmem:[%s3196_s15 + $0x3b0] sm:$0xff] %v755_v54  ;;  %758 = vst [vmem:[%s3196_s15 + $0x3b8] sm:$0xff] %v757_v55  ;;  %v759_v56 = vld [vmem:[%s3191_s14 + $0x780] sm:$0xff]  ;;  %v761_v57 = vld [vmem:[%s3191_s14 + $0x790] sm:$0xff] }
  0x4e   : > { %v763_v58 = vld [vmem:[%s3191_s14 + $0x7a0] sm:$0xff]  ;;  %760 = vst [vmem:[%s3196_s15 + $0x3c0] sm:$0xff] %v759_v56  ;;  %762 = vst [vmem:[%s3196_s15 + $0x3c8] sm:$0xff] %v761_v57  ;;  %v765_v59 = vld [vmem:[%s3191_s14 + $0x7b0] sm:$0xff] }
  0x4f   : > { %764 = vst [vmem:[%s3196_s15 + $0x3d0] sm:$0xff] %v763_v58  ;;  %v767_v60 = vld [vmem:[%s3191_s14 + $0x7c0] sm:$0xff]  ;;  %v769_v61 = vld [vmem:[%s3191_s14 + $0x7d0] sm:$0xff]  ;;  %766 = vst [vmem:[%s3196_s15 + $0x3d8] sm:$0xff] %v765_v59 }
  0x50   : > { %768 = vst [vmem:[%s3196_s15 + $0x3e0] sm:$0xff] %v767_v60  ;;  %770 = vst [vmem:[%s3196_s15 + $0x3e8] sm:$0xff] %v769_v61  ;;  %v771_v62 = vld [vmem:[%s3191_s14 + $0x7e0] sm:$0xff]  ;;  %v773_v63 = vld [vmem:[%s3191_s14 + $0x7f0] sm:$0xff] }
  0x51   : > { %772 = vst [vmem:[%s3196_s15 + $0x3f0] sm:$0xff] %v771_v62  ;;  %774 = vst [vmem:[%s3196_s15 + $0x3f8] sm:$0xff] %v773_v63 }
  0x52 PF: > { %p2566_p5 = scmp.ge.s32.totalorder %s3107_s26, 1  ;;  %p796_p6 = scmp.lt.s32.totalorder %s3107_s26, 3 }
  0x54   : > { %p797_p7 = pnand %p2566_p5, %p796_p6 }
  0x55   : > { %s803_s16 = sand.u32 (!%p797_p7), 1, %s3099_s24   ;;  %s2568_s17 = sshll.u32 (!%p797_p7), %s3171_s27, 1 }
  0x56   : > { %800 = sbr.rel (%p797_p7) target bundleno = 1090 (0x442), region = 82  ;;  %s2567_s18 = sshll.u32 (!%p797_p7), %s803_s16, 10 }
  0x57   : > { %p840_p8 = scmp.lt.s32.totalorder (!%p797_p7), %s2568_s17, 3  ;;  %s2569_s19 = sshll.u32 (!%p797_p7), %s3171_s27, 5 }
  0x58   : > { %p845_p9 = scmp.lt.s32.totalorder (!%p797_p7), %s2569_s19, 63  ;;  %s3467_s24 = scalar_lea.vmem (!%p797_p7), [#allocation4], %s2567_s18 }
  0x59   : > { %p2571_p10 = scmp.ne.s32.totalorder (!%p797_p7), %s3171_s27, 0 }
  0x5d   : > { %s3874_s17 = smov (!%p840_p8, %s2568_s17), 3  ;;  %s3876_s19 = smov (!%p845_p9, %s2569_s19), 63 }
  0x5e   : > { %s842_s22 = scalar_lea.vmem %s3858_s4, %s3874_s17  ;;  %s2570_s23 = sshll.u32 %s3876_s19, 2  ;;  %v2833_v0 = vld [vmem:[%s3854_s0 + $0x4] ss:$16 sps:$4 sm:$0xff] (!%p2571_p10)   ;;  %v2835_v1 = vld [vmem:[%s3854_s0 + $0xc] ss:$16 sps:$4 sm:$0xff] (!%p2571_p10)   ;;  %v3109_v2 = vmov (!%p2571_p10), 0   ;;  %v1037_v15 = vlaneseq (!%p2571_p10) }
  0x5f   : > { %s3465_s30 = scalar_lea.vmem %s3859_s5, %s2570_s23  ;;  %854 = sbr.rel (%p2571_p10) target bundleno = 486 (0x1e6), region = 90  ;;  %958 = vmatprep.mubr.bf16.mxu0 (!%p2571_p10), %v3109_v2  ;;  %1001 = vmatprep.mubr.bf16.mxu1 (!%p2571_p10), %v3109_v2  ;;  %v2837_v3 = vld [vmem:[%s3854_s0] ss:$16 sps:$4 sm:$0xff] (!%p2571_p10)   ;;  %v2838_v4 = vld [vmem:[%s3854_s0 + $0x8] ss:$16 sps:$4 sm:$0xff] (!%p2571_p10)   ;;  %vm922_vm0 = vcmask (!%p2571_p10), 261120  }
  0x60   : > { %926 = vmatprep.subr.bf16.mxu0 (!%p2571_p10), %v2833_v0  ;;  %2812 = vset.pattern.permute.xlu0 (!%p2571_p10), %v3109_v2  ;;  %v2839_v5 = vld [vmem:[%s3854_s0 + $0x24] ss:$16 sps:$4 sm:$0xff] (!%p2571_p10)   ;;  %v2841_v6 = vld [vmem:[%s3854_s0 + $0x2c] ss:$16 sps:$4 sm:$0xff] (!%p2571_p10)   ;;  %v2843_v7 = vld [vmem:[%s3854_s0 + $0x20] ss:$16 sps:$4 sm:$0xff] (!%p2571_p10)  }
  0x61   : > { %969 = vmatprep.subr.bf16.mxu1 (!%p2571_p10), %v2835_v1  ;;  %927 = vmatpush1.bf16.msra.mxu0 (!%p2571_p10), %v2837_v3  ;;  %v2844_v8 = vld [vmem:[%s3854_s0 + $0x28] ss:$16 sps:$4 sm:$0xff] (!%p2571_p10)   ;;  %v865_v9 = vld [vmem:[%s3856_s2] sm:$0xff] (!%p2571_p10)  ;;  %v3110_v13 = vmov (!%p2571_p10), 1966171168   ;;  %v1038_v28 = vshrl.u32 (!%p2571_p10), %v1037_v15, 7 }
  0x62   : > { %970 = vmatpush1.bf16.msra.mxu1 (!%p2571_p10), %v2838_v4  ;;  %928 = vmatprep.subr.bf16.mxu0 (!%p2571_p10), %v2839_v5  ;;  %v2845_v10 = vld [vmem:[%s3855_s1] sm:$0xff] (!%p2571_p10)   ;;  %v866_v11 = vld [vmem:[%s3856_s2 + $0x8] sm:$0xff] (!%p2571_p10)  ;;  %v1035_v14 = vunpack.c.l.s4 (!%p2571_p10), %v3110_v13  ;;  %vm1027_vm1 = vcmask (!%p2571_p10), 516096   ;;  %vm1028_vm2 = vsmask.f32 (!%p2571_p10), 256  ;;  %s3111_s16 = smov (!%p2571_p10), 64  }
  0x63   : > { %971 = vmatprep.subr.bf16.mxu1 (!%p2571_p10), %v2841_v6  ;;  %869 = vperm.xlu0 (!%p2571_p10), %2812, %v865_v9   ;;  %vm3505_vm3 = vmand (!%p2571_p10), %vm1027_vm1, %vm1028_vm2  ;;  %v1030_v50 = vld [vmem:[#allocation2] sm:$0x1] (!%p2571_p10)  ;;  %v1117_v53 = vld [vmem:[#allocation2 + $0x4] sm:$0x1] (!%p2571_p10)  ;;  %vm1292_vm4 = vcmask (!%p2571_p10), 50176   ;;  %vm1056_vm5 = vcmask (!%p2571_p10), 1040896  }
  0x64   : > { %v1036_v27 = vunpack.c.0.s8 (!%p2571_p10), %v1035_v14  ;;  %v1086_v5 = vld [vmem:[#allocation2 + $0x2] sm:$0x1] (!%p2571_p10)  ;;  %v1070_v9 = vld [vmem:[#allocation2 + $0x1] sm:$0x1] (!%p2571_p10)  ;;  %v1187_v13 = vld [vmem:[#allocation2 + $0x7] sm:$0x1] (!%p2571_p10) }
  0x65   : > { %929 = vmatpush1.bf16.msra.mxu0 (!%p2571_p10), %v2843_v7  ;;  %vm3581_vm6 = vmand (!%p2571_p10), %vm1056_vm5, %vm1028_vm2  ;;  %vm1206_vm7 = vsmask.f32 (!%p2571_p10), 7938 }
  0x66   : > { %972 = vmatpush1.bf16.msra.mxu1 %v2844_v8  ;;  %v1039_v48 = vsub.s32 %v1036_v27, %v1038_v28  ;;  %vm3601_vm8 = vmand %vm1027_vm1, %vm1206_vm7 }
  0x67   : > { %874 = vperm.xlu0 %2812, %v866_v11   ;;  %v1171_v11 = vld [vmem:[#allocation2 + $0x6] sm:$0x1]  ;;  %vm3617_vm9 = vmand %vm1056_vm5, %vm1206_vm7 }
  0x68   : > { %2581 = vmatmul.mubr.msk.bf16.vlgmr.msra.gmra.mrb[0].mxu0 %vm922_vm0, %v2845_v10 }
  0x69   : > { %2582 = vmatmul.mubr.msk.bf16.vlgmr.msra.gmra.mrb[0].mxu1 %vm922_vm0, %v2845_v10  ;;  %v1102_v10 = vld [vmem:[#allocation2 + $0x3] sm:$0x1] }
  0xe2   : > { %v870_v12 = vpop.permute.xlu0 %869 }
  0xe6   : > { %v875_v16 = vpop.permute.xlu0 %874 }
 0x13b   : > { %v960_v17 = vpop.f32.mrb[0].mxu0 }
 0x13c   : > { %v1003_v18 = vpop.f32.mrb[0].mxu1  ;;  %v961_v19 = vadd.f32 %v960_v17, %v870_v12  ;;  %v962_v21 = vpop.f32.mrb[1].mxu0 }
 0x13d   : > { %v1004_v20 = vadd.f32 %v1003_v18, %v870_v12  ;;  %v1005_v22 = vpop.f32.mrb[1].mxu1  ;;  %v963_v23 = vadd.f32 %v962_v21, %v870_v12  ;;  %v964_v25 = vpop.f32.mrb[2].mxu0 }
 0x13e   : > { %v1006_v24 = vadd.f32 %v1005_v22, %v870_v12  ;;  %v1007_v26 = vpop.f32.mrb[2].mxu1  ;;  %v1012_v29 = vmax.f32 %v961_v19, 0.0  ;;  %v965_v31 = vadd.f32 %v964_v25, %v875_v16  ;;  %v966_v33 = vpop.f32.mrb[3].mxu0  ;;  %v1155_v12 = vld [vmem:[#allocation2 + $0x5] sm:$0x1] }
 0x13f   : > { %v1014_v30 = vmax.f32 %v1004_v20, 0.0  ;;  %v1008_v32 = vadd.f32 %v1007_v26, %v875_v16  ;;  %v1009_v34 = vpop.f32.mrb[3].mxu1  ;;  %v1013_v35 = vmax.f32 %v963_v23, 0.0  ;;  %v967_v37 = vadd.f32 %v966_v33, %v875_v16 }
 0x140   : > { %v1015_v36 = vmax.f32 %v1006_v24, 0.0  ;;  %v1010_v38 = vadd.f32 %v1009_v34, %v875_v16  ;;  %v1016_v39 = vmax.f32 %v965_v31, 0.0 }
 0x141   : > { %v1018_v40 = vmax.f32 %v1008_v32, 0.0  ;;  %v1020_v41 = vmax.f32 %v1012_v29, %v1013_v35  ;;  %v1017_v43 = vmax.f32 %v967_v37, 0.0  ;;  %v3112_v37 = vmov 0.0  }
 0x142   : > { %v1022_v42 = vmax.f32 %v1014_v30, %v1015_v36  ;;  %v1019_v44 = vmax.f32 %v1010_v38, 0.0  ;;  %1293 = vst.msk [vmem:[#allocation3] sm:$0x3] %vm1292_vm4, %v3112_v37 }
 0x143   : > { %v1021_v46 = vmax.f32 %v1016_v39, %v1017_v43 }
 0x144   : > { %v1024_v45 = vmax.f32 %v1020_v41, %v1022_v42  ;;  %v1023_v47 = vmax.f32 %v1018_v40, %v1019_v44 }
 0x146   : > { %v3509_v51 = vpack.c.bf16 %v1024_v45, %v1024_v45  ;;  %v1025_v52 = vmax.f32 %v1021_v46, %v1023_v47 }
 0x148   : > { %v1031_v54 = vsel %vm3505_vm3, %v3509_v51, %v1030_v50  ;;  %v3514_v55 = vpack.c.bf16 %v1025_v52, %v1025_v52  ;;  %v1040_v56 = vrot.slane %v3509_v51, %v1039_v48 }
 0x149   : > { %1032 = vst [vmem:[#allocation2] sm:$0x1] %v1031_v54 }
 0x14a   : > { %v1118_v57 = vsel %vm3505_vm3, %v3514_v55, %v1117_v53  ;;  %v1127_v58 = vrot.slane %v3514_v55, %v1039_v48  ;;  %v1047_v59 = vrot.slane %v1040_v56, %v1039_v48  ;;  %v1061_v60 = vcombine.high %v1040_v56, %v1040_v56 }
 0x14b   : > { %1119 = vst [vmem:[#allocation2 + $0x4] sm:$0x1] %v1118_v57 }
 0x14c   : > { %v1146_v61 = vcombine.high %v1127_v58, %v1127_v58  ;;  %v1049_v62 = vshrl.u32 %v1047_v59, 16  ;;  %v3521_v63 = vrot.slane %v1061_v60, %v1039_v48  ;;  %v3523_v0 = vcombine.high %v1047_v59, %v1047_v59 }
 0x14d   : > { %v1134_v1 = vrot.slane %v1127_v58, %v1039_v48  ;;  %v1201_v25 = vshll.u32 %v1047_v59, 16 }
 0x14e   : > { %v3525_v2 = vrot.slane %v1146_v61, %v1039_v48  ;;  %1053 = vrot.lane.b32.xlu1 %v1049_v62, %s3111_s16  ;;  %v1090_v3 = vshrl.u32 %v3523_v0, 16  ;;  %v3531_v4 = vcombine.high %v3521_v63, %v3521_v63  ;;  %v1074_v6 = vshrl.u32 %v3521_v63, 16 }
 0x14f   : > { %v3535_v7 = vcombine.high %v1134_v1, %v1134_v1  ;;  %v1136_v14 = vshrl.u32 %v1134_v1, 16  ;;  %v1087_v15 = vsel %vm3505_vm3, %v3523_v0, %v1086_v5  ;;  %v1071_v16 = vsel %vm3505_vm3, %v3521_v63, %v1070_v9 }
 0x150   : > { %1094 = vrot.lane.b32.xlu0 %v1090_v3, %s3111_s16  ;;  %v3539_v8 = vcombine.high %v3525_v2, %v3525_v2  ;;  %v1103_v17 = vsel %vm3505_vm3, %v3531_v4, %v1102_v10  ;;  %v1106_v18 = vshrl.u32 %v3531_v4, 16  ;;  %1088 = vst [vmem:[#allocation2 + $0x2] sm:$0x1] %v1087_v15  ;;  %1072 = vst [vmem:[#allocation2 + $0x1] sm:$0x1] %v1071_v16  ;;  %v1215_v23 = vshll.u32 %v3521_v63, 16 }
 0x151   : > { %1104 = vst [vmem:[#allocation2 + $0x3] sm:$0x1] %v1103_v17  ;;  %v1172_v19 = vsel %vm3505_vm3, %v3535_v7, %v1171_v11  ;;  %v1156_v20 = vsel %vm3505_vm3, %v3525_v2, %v1155_v12  ;;  %v1175_v22 = vshrl.u32 %v3535_v7, 16  ;;  %v1159_v24 = vshrl.u32 %v3525_v2, 16  ;;  %v1058_v40 = vld [vmem:[#allocation2] sm:$0x1] }
 0x152   : > { %1078 = vrot.lane.b32.xlu1 %v1074_v6, %s3111_s16  ;;  %v1188_v21 = vsel %vm3505_vm3, %v3539_v8, %v1187_v13  ;;  %1173 = vst [vmem:[#allocation2 + $0x6] sm:$0x1] %v1172_v19  ;;  %1157 = vst [vmem:[#allocation2 + $0x5] sm:$0x1] %v1156_v20  ;;  %v2813_v26 = vpack.i.bf16 %v1215_v23, %v1201_v25  ;;  %v1259_v27 = vshll.u32 %v3525_v2, 16  ;;  %v1191_v28 = vshrl.u32 %v3539_v8, 16 }
 0x153   : > { %1189 = vst [vmem:[#allocation2 + $0x7] sm:$0x1] %v1188_v21  ;;  %v1248_v29 = vshll.u32 %v1134_v1, 16  ;;  %v1237_v30 = vshll.u32 %v3531_v4, 16  ;;  %v1226_v32 = vshll.u32 %v3523_v0, 16  ;;  %v1281_v34 = vshll.u32 %v3539_v8, 16 }
 0x154   : > { %1140 = vrot.lane.b32.xlu0 %v1136_v14, %s3111_s16  ;;  %v1270_v35 = vshll.u32 %v3535_v7, 16  ;;  %v1143_v48 = vld [vmem:[#allocation2 + $0x4] sm:$0x1] }
 0x155   : > { %v2823_v31 = vpack.i.bf16 %v1259_v27, %v1248_v29  ;;  %v2818_v33 = vpack.i.bf16 %v1237_v30, %v1226_v32 }
 0x156   : > { %1110 = vrot.lane.b32.xlu1 %v1106_v18, %s3111_s16  ;;  %v2828_v36 = vpack.i.bf16 %v1281_v34, %v1270_v35 }
 0x157   : > { %v1097_v43 = vld [vmem:[#allocation2 + $0x2] sm:$0x1]  ;;  %v1081_v45 = vld [vmem:[#allocation2 + $0x1] sm:$0x1] }
 0x158   : > { %1179 = vrot.lane.b32.xlu0 %v1175_v22, %s3111_s16  ;;  %v1113_v52 = vld [vmem:[#allocation2 + $0x3] sm:$0x1] }
 0x159   : > { %v1182_v56 = vld [vmem:[#allocation2 + $0x6] sm:$0x1]  ;;  %v1166_v59 = vld [vmem:[#allocation2 + $0x5] sm:$0x1] }
 0x15a   : > { %1163 = vrot.lane.b32.xlu1 %v1159_v24, %s3111_s16  ;;  %v1198_v10 = vld [vmem:[#allocation2 + $0x7] sm:$0x1] }
 0x15c   : > { %2814 = vrot.lane.b32.xlu0 %v2813_v26, %s3111_s16 }
 0x15e   : > { %1195 = vrot.lane.b32.xlu1 %v1191_v28, %s3111_s16 }
 0x160   : > { %2824 = vrot.lane.b32.xlu0 %v2823_v31, %s3111_s16 }
 0x162   : > { %2819 = vrot.lane.b32.xlu1 %v2818_v33, %s3111_s16 }
 0x166   : > { %2829 = vrot.lane.b32.xlu1 %v2828_v36, %s3111_s16 }
 0x1c0   : > { %v1054_v39 = vpop.permute.xlu1 %1053 }
 0x1c1   : > { %v1059_v41 = vsel %vm3581_vm6, %v1054_v39, %v1058_v40 }
 0x1c2   : > { %1060 = vst [vmem:[#allocation2] sm:$0x1] %v1059_v41  ;;  %v1095_v42 = vpop.permute.xlu0 %1094 }
 0x1c3   : > { %v1098_v44 = vsel %vm3581_vm6, %v1095_v42, %v1097_v43 }
 0x1c4   : > { %1099 = vst [vmem:[#allocation2 + $0x2] sm:$0x1] %v1098_v44  ;;  %v1079_v46 = vpop.permute.xlu1 %1078 }
 0x1c5   : > { %v1082_v47 = vsel %vm3581_vm6, %v1079_v46, %v1081_v45 }
 0x1c6   : > { %1083 = vst [vmem:[#allocation2 + $0x1] sm:$0x1] %v1082_v47  ;;  %v1141_v49 = vpop.permute.xlu0 %1140 }
 0x1c7   : > { %v1144_v50 = vsel %vm3581_vm6, %v1141_v49, %v1143_v48 }
 0x1c8   : > { %1145 = vst [vmem:[#allocation2 + $0x4] sm:$0x1] %v1144_v50  ;;  %v1111_v53 = vpop.permute.xlu1 %1110 }
 0x1c9   : > { %v1114_v54 = vsel %vm3581_vm6, %v1111_v53, %v1113_v52  ;;  %v1208_v6 = vld [vmem:[#allocation2] sm:$0x1] }
 0x1ca   : > { %1115 = vst [vmem:[#allocation2 + $0x3] sm:$0x1] %v1114_v54  ;;  %v1180_v57 = vpop.permute.xlu0 %1179 }
 0x1cb   : > { %v1183_v58 = vsel %vm3581_vm6, %v1180_v57, %v1182_v56  ;;  %v1231_v25 = vld [vmem:[#allocation2 + $0x2] sm:$0x1] }
 0x1cc   : > { %1184 = vst [vmem:[#allocation2 + $0x6] sm:$0x1] %v1183_v58  ;;  %v1164_v60 = vpop.permute.xlu1 %1163 }
 0x1cd   : > { %v1167_v61 = vsel %vm3581_vm6, %v1164_v60, %v1166_v59  ;;  %v1220_v9 = vld [vmem:[#allocation2 + $0x1] sm:$0x1] }
 0x1ce   : > { %1168 = vst [vmem:[#allocation2 + $0x5] sm:$0x1] %v1167_v61  ;;  %v2815_v1 = vpop.permute.xlu0 %2814 }
 0x1cf   : > { %v2817_v3 = vunpack.i.h.bf16 %v2815_v1  ;;  %v2816_v5 = vunpack.i.l.bf16 %v2815_v1  ;;  %v1253_v18 = vld [vmem:[#allocation2 + $0x4] sm:$0x1] }
 0x1d0   : > { %v1196_v11 = vpop.permute.xlu1 %1195 }
 0x1d1   : > { %v1209_v12 = vsel %vm3601_vm8, %v2816_v5, %v1208_v6  ;;  %v1221_v13 = vsel %vm3601_vm8, %v2817_v3, %v1220_v9  ;;  %v1199_v14 = vsel %vm3581_vm6, %v1196_v11, %v1198_v10  ;;  %v1242_v26 = vld [vmem:[#allocation2 + $0x3] sm:$0x1] }
 0x1d2   : > { %1210 = vst [vmem:[#allocation2] sm:$0x1] %v1209_v12  ;;  %1222 = vst [vmem:[#allocation2 + $0x1] sm:$0x1] %v1221_v13  ;;  %v2825_v15 = vpop.permute.xlu0 %2824 }
 0x1d3   : > { %1200 = vst [vmem:[#allocation2 + $0x7] sm:$0x1] %v1199_v14  ;;  %v2827_v16 = vunpack.i.h.bf16 %v2825_v15  ;;  %v2826_v17 = vunpack.i.l.bf16 %v2825_v15  ;;  %v1275_v38 = vld [vmem:[#allocation2 + $0x6] sm:$0x1] }
 0x1d4   : > { %v2820_v19 = vpop.permute.xlu1 %2819 }
 0x1d5   : > { %v1254_v20 = vsel %vm3601_vm8, %v2826_v17, %v1253_v18  ;;  %v1264_v21 = vld [vmem:[#allocation2 + $0x5] sm:$0x1]  ;;  %v2822_v22 = vunpack.i.h.bf16 %v2820_v19  ;;  %v2821_v23 = vunpack.i.l.bf16 %v2820_v19 }
 0x1d6   : > { %1255 = vst [vmem:[#allocation2 + $0x4] sm:$0x1] %v1254_v20  ;;  %v1265_v24 = vsel %vm3601_vm8, %v2827_v16, %v1264_v21 }
 0x1d7   : > { %1266 = vst [vmem:[#allocation2 + $0x5] sm:$0x1] %v1265_v24  ;;  %v1243_v28 = vsel %vm3601_vm8, %v2822_v22, %v1242_v26  ;;  %v1232_v29 = vsel %vm3601_vm8, %v2821_v23, %v1231_v25 }
 0x1d8   : > { %1244 = vst [vmem:[#allocation2 + $0x3] sm:$0x1] %v1243_v28  ;;  %1233 = vst [vmem:[#allocation2 + $0x2] sm:$0x1] %v1232_v29  ;;  %v2830_v30 = vpop.permute.xlu1 %2829 }
 0x1d9   : > { %v1212_v31 = vld [vmem:[#allocation2] sm:$0x1]  ;;  %v1223_v32 = vld [vmem:[#allocation2 + $0x1] sm:$0x1]  ;;  %v2832_v34 = vunpack.i.h.bf16 %v2830_v30  ;;  %v2831_v35 = vunpack.i.l.bf16 %v2830_v30 }
 0x1da   : > { %v1286_v33 = vld [vmem:[#allocation2 + $0x7] sm:$0x1]  ;;  %v1213_v36 = vsel %vm3617_vm9, %v3509_v51, %v1212_v31  ;;  %v1224_v37 = vsel %vm3617_vm9, %v3521_v63, %v1223_v32 }
 0x1db   : > { %1214 = vst [vmem:[#allocation2] sm:$0x1] %v1213_v36  ;;  %1225 = vst [vmem:[#allocation2 + $0x1] sm:$0x1] %v1224_v37  ;;  %v1287_v39 = vsel %vm3601_vm8, %v2832_v34, %v1286_v33  ;;  %v1276_v40 = vsel %vm3601_vm8, %v2831_v35, %v1275_v38 }
 0x1dc   : > { %1288 = vst [vmem:[#allocation2 + $0x7] sm:$0x1] %v1287_v39  ;;  %1277 = vst [vmem:[#allocation2 + $0x6] sm:$0x1] %v1276_v40 }
 0x1dd   : > { %v1256_v41 = vld [vmem:[#allocation2 + $0x4] sm:$0x1] }
 0x1de   : > { %v1257_v51 = vsel %vm3617_vm9, %v3514_v55, %v1256_v41  ;;  %v1267_v42 = vld [vmem:[#allocation2 + $0x5] sm:$0x1] }
 0x1df   : > { %1258 = vst [vmem:[#allocation2 + $0x4] sm:$0x1] %v1257_v51  ;;  %v1268_v63 = vsel %vm3617_vm9, %v3525_v2, %v1267_v42  ;;  %v1245_v43 = vld [vmem:[#allocation2 + $0x3] sm:$0x1]  ;;  %v1234_v44 = vld [vmem:[#allocation2 + $0x2] sm:$0x1] }
 0x1e0   : > { %1269 = vst [vmem:[#allocation2 + $0x5] sm:$0x1] %v1268_v63  ;;  %v1246_v45 = vsel %vm3617_vm9, %v3531_v4, %v1245_v43  ;;  %v1235_v46 = vsel %vm3617_vm9, %v3523_v0, %v1234_v44 }
 0x1e1   : > { %1247 = vst [vmem:[#allocation2 + $0x3] sm:$0x1] %v1246_v45  ;;  %1236 = vst [vmem:[#allocation2 + $0x2] sm:$0x1] %v1235_v46 }
 0x1e3   : > { %v1289_v55 = vld [vmem:[#allocation2 + $0x7] sm:$0x1]  ;;  %v1278_v47 = vld [vmem:[#allocation2 + $0x6] sm:$0x1] }
 0x1e4   : > { %v1290_v48 = vsel %vm3617_vm9, %v3539_v8, %v1289_v55  ;;  %v1279_v2 = vsel %vm3617_vm9, %v3535_v7, %v1278_v47 }
 0x1e5   : > { %1291 = vst [vmem:[#allocation2 + $0x7] sm:$0x1] %v1290_v48  ;;  %1280 = vst [vmem:[#allocation2 + $0x6] sm:$0x1] %v1279_v2 }
 0x1e6 PF: > { %v2846_v0 = vld [vmem:[%s3467_s24 + $0x4] ss:$8 sps:$4 sm:$0xff]   ;;  %v2850_v8 = vld [vmem:[%s3467_s24] ss:$8 sps:$4 sm:$0xff]   ;;  %v2852_v49 = vld [vmem:[%s3467_s24 + $0x14] ss:$8 sps:$4 sm:$0xff]   ;;  %v1425_v25 = vlaneseq }
 0x1e7   : > { %v2848_v4 = vld [vmem:[%s3467_s24 + $0x204] ss:$8 sps:$4 sm:$0xff]   ;;  %2133 = vmatprep.subr.bf16.mxu1 %v2846_v0  ;;  %v2851_v7 = vld [vmem:[%s3467_s24 + $0x200] ss:$8 sps:$4 sm:$0xff]   ;;  %v2854_v50 = vld [vmem:[%s3467_s24 + $0x214] ss:$8 sps:$4 sm:$0xff]  }
 0x1e8   : > { %2215 = vmatprep.subr.bf16.mxu0 %v2848_v4  ;;  %2134 = vmatpush1.bf16.msra.mxu1 %v2850_v8  ;;  %v2856_v52 = vld [vmem:[%s3467_s24 + $0x10] ss:$8 sps:$4 sm:$0xff]   ;;  %v2858_v54 = vld [vmem:[%s3467_s24 + $0x24] ss:$8 sps:$4 sm:$0xff]   ;;  %v2862_v57 = vld [vmem:[%s3467_s24 + $0x20] ss:$8 sps:$4 sm:$0xff]  }
 0x1e9   : > { %2216 = vmatpush1.bf16.msra.mxu0 %v2851_v7  ;;  %2135 = vmatprep.subr.bf16.mxu1 %v2852_v49  ;;  %v2857_v53 = vld [vmem:[%s3467_s24 + $0x210] ss:$8 sps:$4 sm:$0xff]   ;;  %v2860_v56 = vld [vmem:[%s3467_s24 + $0x224] ss:$8 sps:$4 sm:$0xff]   ;;  %v2863_v58 = vld [vmem:[%s3467_s24 + $0x220] ss:$8 sps:$4 sm:$0xff]  }
 0x1ea   : > { %2217 = vmatprep.subr.bf16.mxu0 %v2854_v50  ;;  %v2864_v59 = vld [vmem:[%s3467_s24 + $0x34] ss:$8 sps:$4 sm:$0xff]   ;;  %v2868_v61 = vld [vmem:[%s3467_s24 + $0x30] ss:$8 sps:$4 sm:$0xff]   ;;  %v2870_v1 = vld [vmem:[%s3467_s24 + $0x44] ss:$8 sps:$4 sm:$0xff]  }
 0x1eb   : > { %v2866_v60 = vld [vmem:[%s3467_s24 + $0x234] ss:$8 sps:$4 sm:$0xff]   ;;  %v2869_v62 = vld [vmem:[%s3467_s24 + $0x230] ss:$8 sps:$4 sm:$0xff]   ;;  %v2872_v3 = vld [vmem:[%s3467_s24 + $0x244] ss:$8 sps:$4 sm:$0xff]  }
 0x1ec   : > { %2136 = vmatpush1.bf16.msra.mxu1 %v2856_v52  ;;  %v2874_v5 = vld [vmem:[%s3467_s24 + $0x40] ss:$8 sps:$4 sm:$0xff]   ;;  %v2876_v9 = vld [vmem:[%s3467_s24 + $0x54] ss:$8 sps:$4 sm:$0xff]   ;;  %v2880_v11 = vld [vmem:[%s3467_s24 + $0x50] ss:$8 sps:$4 sm:$0xff]  }
 0x1ed   : > { %2218 = vmatpush1.bf16.msra.mxu0 %v2857_v53  ;;  %2137 = vmatprep.subr.bf16.mxu1 %v2858_v54  ;;  %v2875_v6 = vld [vmem:[%s3467_s24 + $0x240] ss:$8 sps:$4 sm:$0xff]   ;;  %v2878_v10 = vld [vmem:[%s3467_s24 + $0x254] ss:$8 sps:$4 sm:$0xff]   ;;  %v2881_v12 = vld [vmem:[%s3467_s24 + $0x250] ss:$8 sps:$4 sm:$0xff]  }
 0x1ee   : > { %2219 = vmatprep.subr.bf16.mxu0 %v2860_v56  ;;  %v2882_v13 = vld [vmem:[%s3467_s24 + $0x64] ss:$8 sps:$4 sm:$0xff]   ;;  %v2886_v15 = vld [vmem:[%s3467_s24 + $0x60] ss:$8 sps:$4 sm:$0xff]   ;;  %v2888_v17 = vld [vmem:[%s3467_s24 + $0x74] ss:$8 sps:$4 sm:$0xff]  }
 0x1ef   : > { %v2884_v14 = vld [vmem:[%s3467_s24 + $0x264] ss:$8 sps:$4 sm:$0xff]   ;;  %v2887_v16 = vld [vmem:[%s3467_s24 + $0x260] ss:$8 sps:$4 sm:$0xff]   ;;  %v2890_v18 = vld [vmem:[%s3467_s24 + $0x274] ss:$8 sps:$4 sm:$0xff]  }
 0x1f0   : > { %2138 = vmatpush1.bf16.msra.mxu1 %v2862_v57  ;;  %v2892_v19 = vld [vmem:[%s3467_s24 + $0x70] ss:$8 sps:$4 sm:$0xff]   ;;  %v2894_v21 = vld [vmem:[%s3467_s24 + $0x84] ss:$8 sps:$4 sm:$0xff]   ;;  %v2898_v23 = vld [vmem:[%s3467_s24 + $0x80] ss:$8 sps:$4 sm:$0xff]  }
 0x1f1   : > { %2220 = vmatpush1.bf16.msra.mxu0 %v2863_v58  ;;  %2139 = vmatprep.subr.bf16.mxu1 %v2864_v59  ;;  %v2893_v20 = vld [vmem:[%s3467_s24 + $0x270] ss:$8 sps:$4 sm:$0xff]   ;;  %v2896_v22 = vld [vmem:[%s3467_s24 + $0x284] ss:$8 sps:$4 sm:$0xff]   ;;  %v2899_v24 = vld [vmem:[%s3467_s24 + $0x280] ss:$8 sps:$4 sm:$0xff]  }
 0x1f2   : > { %2221 = vmatprep.subr.bf16.mxu0 %v2866_v60  ;;  %v3113_v26 = vmov 1966171168   ;;  %v2900_v28 = vld [vmem:[%s3467_s24 + $0x94] ss:$8 sps:$4 sm:$0xff]   ;;  %v2904_v30 = vld [vmem:[%s3467_s24 + $0x90] ss:$8 sps:$4 sm:$0xff]  }
 0x1f3   : > { %v1438_v27 = vunpack.c.l.s4 %v3113_v26  ;;  %v2902_v29 = vld [vmem:[%s3467_s24 + $0x294] ss:$8 sps:$4 sm:$0xff]   ;;  %v3692_v31 = vshrl.u32 %v1425_v25, 7  ;;  %v2905_v33 = vld [vmem:[%s3467_s24 + $0x290] ss:$8 sps:$4 sm:$0xff]   ;;  %vm2471_vm10 = vcmask 50176  }
 0x1f4   : > { %2140 = vmatpush1.bf16.msra.mxu1 %v2868_v61  ;;  %v2906_v34 = vld [vmem:[%s3467_s24 + $0xa4] ss:$8 sps:$4 sm:$0xff]   ;;  %v2910_v36 = vld [vmem:[%s3467_s24 + $0xa0] ss:$8 sps:$4 sm:$0xff]   ;;  %v2912_v39 = vld [vmem:[%s3467_s24 + $0xb4] ss:$8 sps:$4 sm:$0xff]  }
 0x1f5   : > { %2222 = vmatpush1.bf16.msra.mxu0 %v2869_v62  ;;  %2141 = vmatprep.subr.bf16.mxu1 %v2870_v1  ;;  %v1439_v32 = vunpack.c.0.s8 %v1438_v27  ;;  %v2908_v35 = vld [vmem:[%s3467_s24 + $0x2a4] ss:$8 sps:$4 sm:$0xff]   ;;  %v2911_v37 = vld [vmem:[%s3467_s24 + $0x2a0] ss:$8 sps:$4 sm:$0xff]   ;;  %v2914_v40 = vld [vmem:[%s3467_s24 + $0x2b4] ss:$8 sps:$4 sm:$0xff]  }
 0x1f6   : > { %2223 = vmatprep.subr.bf16.mxu0 %v2872_v3  ;;  %v1294_v41 = vld [vmem:[#allocation2] sm:$0xff]  ;;  %v2918_v44 = vld [vmem:[%s3467_s24 + $0xc4] ss:$8 sps:$4 sm:$0xff]   ;;  %v2922_v47 = vld [vmem:[%s3467_s24 + $0xc0] ss:$8 sps:$4 sm:$0xff]   ;;  %p2735_p11 = scmp.ne.s32.totalorder %s3171_s27, 1 }
 0x1f7   : > { %v1442_v38 = vsub.s32 %v1439_v32, %v3692_v31  ;;  %v2916_v51 = vld [vmem:[%s3467_s24 + $0xb0] ss:$8 sps:$4 sm:$0xff]   ;;  %v1436_v63 = vcombine.high %v1294_v41, %v1294_v41  ;;  %v2920_v45 = vld [vmem:[%s3467_s24 + $0x2c4] ss:$8 sps:$4 sm:$0xff]   ;;  %v2923_v0 = vld [vmem:[%s3467_s24 + $0x2c0] ss:$8 sps:$4 sm:$0xff]  }
 0x1f8   : > { %2142 = vmatpush1.bf16.msra.mxu1 %v2874_v5  ;;  %v2917_v43 = vld [vmem:[%s3467_s24 + $0x2b0] ss:$8 sps:$4 sm:$0xff]   ;;  %v2924_v4 = vld [vmem:[%s3467_s24 + $0xd4] ss:$8 sps:$4 sm:$0xff]   ;;  %v2930_v52 = vld [vmem:[%s3467_s24 + $0xe4] ss:$8 sps:$4 sm:$0xff]  }
 0x1f9   : > { %2224 = vmatpush1.bf16.msra.mxu0 %v2875_v6  ;;  %2143 = vmatprep.subr.bf16.mxu1 %v2876_v9  ;;  %v1443_v42 = vrot.slane %v1294_v41, %v1442_v38  ;;  %v1450_v55 = vrot.slane %v1436_v63, %v1442_v38  ;;  %v2926_v8 = vld [vmem:[%s3467_s24 + $0x2d4] ss:$8 sps:$4 sm:$0xff]   ;;  %v2928_v49 = vld [vmem:[%s3467_s24 + $0xd0] ss:$8 sps:$4 sm:$0xff]   ;;  %v2932_v53 = vld [vmem:[%s3467_s24 + $0x2e4] ss:$8 sps:$4 sm:$0xff]  }
 0x1fa   : > { %2225 = vmatprep.subr.bf16.mxu0 %v2878_v10  ;;  %v2929_v50 = vld [vmem:[%s3467_s24 + $0x2d0] ss:$8 sps:$4 sm:$0xff]   ;;  %v2934_v54 = vld [vmem:[%s3467_s24 + $0xe0] ss:$8 sps:$4 sm:$0xff]   ;;  %v2936_v57 = vld [vmem:[%s3467_s24 + $0xf4] ss:$8 sps:$4 sm:$0xff]  }
 0x1fb   : > { %v1451_v46 = vcombine.high %v1443_v42, %v1443_v42  ;;  %v1452_v2 = vcombine.high %v1450_v55, %v1450_v55  ;;  %v2935_v56 = vld [vmem:[%s3467_s24 + $0x2e0] ss:$8 sps:$4 sm:$0xff]   ;;  %v2938_v58 = vld [vmem:[%s3467_s24 + $0x2f4] ss:$8 sps:$4 sm:$0xff]   ;;  %v2940_v59 = vld [vmem:[%s3467_s24 + $0xf0] ss:$8 sps:$4 sm:$0xff]   ;;  %v3723_v3 = vrot.slane %v1443_v42, %v1442_v38  ;;  %v3725_v5 = vrot.slane %v1450_v55, %v1442_v38 }
 0x1fc   : > { %2144 = vmatpush1.bf16.msra.mxu1 %v2880_v11  ;;  %v2941_v60 = vld [vmem:[%s3467_s24 + $0x2f0] ss:$8 sps:$4 sm:$0xff]   ;;  %v2944_v61 = vld [vmem:[%s3467_s24 + $0x104] ss:$8 sps:$4 sm:$0xff]   ;;  %v2942_v1 = vld [vmem:[%s3467_s24 + $0x100] ss:$8 sps:$4 sm:$0xff]  }
 0x1fd   : > { %2226 = vmatpush1.bf16.msra.mxu0 %v2881_v12  ;;  %2145 = vmatprep.subr.bf16.mxu1 %v2882_v13  ;;  %v1473_v48 = vrot.slane %v1451_v46, %v1442_v38  ;;  %v1480_v7 = vrot.slane %v1452_v2, %v1442_v38  ;;  %v2948_v62 = vld [vmem:[%s3467_s24 + $0x304] ss:$8 sps:$4 sm:$0xff]   ;;  %v2946_v6 = vld [vmem:[%s3467_s24 + $0x300] ss:$8 sps:$4 sm:$0xff]   ;;  %v2951_v9 = vld [vmem:[%s3467_s24 + $0x114] ss:$8 sps:$4 sm:$0xff]  }
 0x1fe   : > { %2227 = vmatprep.subr.bf16.mxu0 %v2884_v14  ;;  %v2954_v10 = vld [vmem:[%s3467_s24 + $0x314] ss:$8 sps:$4 sm:$0xff]   ;;  %v2949_v13 = vld [vmem:[%s3467_s24 + $0x110] ss:$8 sps:$4 sm:$0xff]   ;;  %v2967_v25 = vld [vmem:[%s3467_s24 + $0x140] ss:$8 sps:$4 sm:$0xff]  }
 0x1ff   : > { %2165 = vmatprep.mubr.bf16.mxu1 %v1473_v48  ;;  %2247 = vmatprep.mubr.bf16.mxu0 %v1480_v7  ;;  %v1483_v11 = vcombine.high %v1473_v48, %v1473_v48  ;;  %v1484_v12 = vcombine.high %v1480_v7, %v1480_v7  ;;  %v2952_v14 = vld [vmem:[%s3467_s24 + $0x310] ss:$8 sps:$4 sm:$0xff]   ;;  %v2970_v26 = vld [vmem:[%s3467_s24 + $0x340] ss:$8 sps:$4 sm:$0xff]   ;;  %v2975_v27 = vld [vmem:[%s3467_s24 + $0x154] ss:$8 sps:$4 sm:$0xff]  }
 0x200   : > { %2146 = vmatpush1.bf16.msra.mxu1 %v2886_v15  ;;  %v2957_v15 = vld [vmem:[%s3467_s24 + $0x124] ss:$8 sps:$4 sm:$0xff]   ;;  %v2985_v38 = vld [vmem:[%s3467_s24 + $0x170] ss:$8 sps:$4 sm:$0xff]   ;;  %v2994_v42 = vld [vmem:[%s3467_s24 + $0x380] ss:$8 sps:$4 sm:$0xff]  }
 0x201   : > { %2228 = vmatpush1.bf16.msra.mxu0 %v2887_v16  ;;  %2147 = vmatprep.subr.bf16.mxu1 %v2888_v17  ;;  %v2960_v16 = vld [vmem:[%s3467_s24 + $0x324] ss:$8 sps:$4 sm:$0xff]   ;;  %v2955_v17 = vld [vmem:[%s3467_s24 + $0x120] ss:$8 sps:$4 sm:$0xff]   ;;  %v2999_v63 = vld [vmem:[%s3467_s24 + $0x194] ss:$8 sps:$4 sm:$0xff]  }
 0x202   : > { %2229 = vmatprep.subr.bf16.mxu0 %v2890_v18  ;;  %v2958_v18 = vld [vmem:[%s3467_s24 + $0x320] ss:$8 sps:$4 sm:$0xff]   ;;  %v2981_v32 = vld [vmem:[%s3467_s24 + $0x164] ss:$8 sps:$4 sm:$0xff]   ;;  %v3011_v2 = vld [vmem:[%s3467_s24 + $0x1b4] ss:$8 sps:$4 sm:$0xff]  }
 0x203   : > { %v2996_v41 = vld [vmem:[%s3467_s24 + $0x384] ss:$8 sps:$4 sm:$0xff]   ;;  %v3006_v48 = vld [vmem:[%s3467_s24 + $0x3a0] ss:$8 sps:$4 sm:$0xff]  }
 0x204   : > { %2148 = vmatpush1.bf16.msra.mxu1 %v2892_v19  ;;  %v2963_v19 = vld [vmem:[%s3467_s24 + $0x134] ss:$8 sps:$4 sm:$0xff]   ;;  %v3005_v46 = vld [vmem:[%s3467_s24 + $0x1a4] ss:$8 sps:$4 sm:$0xff]  }
 0x205   : > { %2230 = vmatpush1.bf16.msra.mxu0 %v2893_v20  ;;  %2149 = vmatprep.subr.bf16.mxu1 %v2894_v21  ;;  %v2966_v20 = vld [vmem:[%s3467_s24 + $0x334] ss:$8 sps:$4 sm:$0xff]   ;;  %v2961_v21 = vld [vmem:[%s3467_s24 + $0x130] ss:$8 sps:$4 sm:$0xff]   ;;  %v3008_v55 = vld [vmem:[%s3467_s24 + $0x3a4] ss:$8 sps:$4 sm:$0xff]  }
 0x206   : > { %2231 = vmatprep.subr.bf16.mxu0 %v2896_v22  ;;  %v2964_v22 = vld [vmem:[%s3467_s24 + $0x330] ss:$8 sps:$4 sm:$0xff]   ;;  %v3017_v7 = vld [vmem:[%s3467_s24 + $0x1c4] ss:$8 sps:$4 sm:$0xff]  }
 0x208   : > { %2150 = vmatpush1.bf16.msra.mxu1 %v2898_v23  ;;  %v2969_v23 = vld [vmem:[%s3467_s24 + $0x144] ss:$8 sps:$4 sm:$0xff]  }
 0x209   : > { %2232 = vmatpush1.bf16.msra.mxu0 %v2899_v24  ;;  %2151 = vmatprep.subr.bf16.mxu1 %v2900_v28  ;;  %v2972_v24 = vld [vmem:[%s3467_s24 + $0x344] ss:$8 sps:$4 sm:$0xff]   ;;  %v2978_v28 = vld [vmem:[%s3467_s24 + $0x354] ss:$8 sps:$4 sm:$0xff]  }
 0x20a   : > { %2233 = vmatprep.subr.bf16.mxu0 %v2902_v29  ;;  %v2973_v29 = vld [vmem:[%s3467_s24 + $0x150] ss:$8 sps:$4 sm:$0xff]  }
 0x20c   : > { %2152 = vmatpush1.bf16.msra.mxu1 %v2904_v30  ;;  %v2976_v30 = vld [vmem:[%s3467_s24 + $0x350] ss:$8 sps:$4 sm:$0xff]  }
 0x20d   : > { %2234 = vmatpush1.bf16.msra.mxu0 %v2905_v33  ;;  %2153 = vmatprep.subr.bf16.mxu1 %v2906_v34  ;;  %v2984_v33 = vld [vmem:[%s3467_s24 + $0x364] ss:$8 sps:$4 sm:$0xff]   ;;  %v2979_v34 = vld [vmem:[%s3467_s24 + $0x160] ss:$8 sps:$4 sm:$0xff]  }
 0x20e   : > { %2235 = vmatprep.subr.bf16.mxu0 %v2908_v35  ;;  %v2982_v35 = vld [vmem:[%s3467_s24 + $0x360] ss:$8 sps:$4 sm:$0xff]  }
 0x210   : > { %2154 = vmatpush1.bf16.msra.mxu1 %v2910_v36  ;;  %v2987_v36 = vld [vmem:[%s3467_s24 + $0x174] ss:$8 sps:$4 sm:$0xff]  }
 0x211   : > { %2236 = vmatpush1.bf16.msra.mxu0 %v2911_v37  ;;  %2155 = vmatprep.subr.bf16.mxu1 %v2912_v39  ;;  %v2990_v37 = vld [vmem:[%s3467_s24 + $0x374] ss:$8 sps:$4 sm:$0xff]   ;;  %v2988_v39 = vld [vmem:[%s3467_s24 + $0x370] ss:$8 sps:$4 sm:$0xff]  }
 0x212   : > { %2237 = vmatprep.subr.bf16.mxu0 %v2914_v40  ;;  %v2993_v40 = vld [vmem:[%s3467_s24 + $0x184] ss:$8 sps:$4 sm:$0xff]  }
 0x214   : > { %2156 = vmatpush1.bf16.msra.mxu1 %v2916_v51  ;;  %v2991_v51 = vld [vmem:[%s3467_s24 + $0x180] ss:$8 sps:$4 sm:$0xff]  }
 0x215   : > { %2238 = vmatpush1.bf16.msra.mxu0 %v2917_v43  ;;  %2157 = vmatprep.subr.bf16.mxu1 %v2918_v44  ;;  %v3002_v43 = vld [vmem:[%s3467_s24 + $0x394] ss:$8 sps:$4 sm:$0xff]   ;;  %v2997_v44 = vld [vmem:[%s3467_s24 + $0x190] ss:$8 sps:$4 sm:$0xff]  }
 0x216   : > { %2239 = vmatprep.subr.bf16.mxu0 %v2920_v45  ;;  %v3000_v45 = vld [vmem:[%s3467_s24 + $0x390] ss:$8 sps:$4 sm:$0xff]  }
 0x218   : > { %2158 = vmatpush1.bf16.msra.mxu1 %v2922_v47  ;;  %v3003_v47 = vld [vmem:[%s3467_s24 + $0x1a0] ss:$8 sps:$4 sm:$0xff]  }
 0x219   : > { %2240 = vmatpush1.bf16.msra.mxu0 %v2923_v0  ;;  %2159 = vmatprep.subr.bf16.mxu1 %v2924_v4  ;;  %v3014_v0 = vld [vmem:[%s3467_s24 + $0x3b4] ss:$8 sps:$4 sm:$0xff]   ;;  %v3009_v4 = vld [vmem:[%s3467_s24 + $0x1b0] ss:$8 sps:$4 sm:$0xff]  }
 0x21a   : > { %2241 = vmatprep.subr.bf16.mxu0 %v2926_v8  ;;  %v3012_v8 = vld [vmem:[%s3467_s24 + $0x3b0] ss:$8 sps:$4 sm:$0xff]  }
 0x21c   : > { %2160 = vmatpush1.bf16.msra.mxu1 %v2928_v49  ;;  %v3020_v49 = vld [vmem:[%s3467_s24 + $0x3c4] ss:$8 sps:$4 sm:$0xff]  }
 0x21d   : > { %2242 = vmatpush1.bf16.msra.mxu0 %v2929_v50  ;;  %2161 = vmatprep.subr.bf16.mxu1 %v2930_v52  ;;  %v3015_v50 = vld [vmem:[%s3467_s24 + $0x1c0] ss:$8 sps:$4 sm:$0xff]  }
 0x21e   : > { %2243 = vmatprep.subr.bf16.mxu0 %v2932_v53  ;;  %v3018_v52 = vld [vmem:[%s3467_s24 + $0x3c0] ss:$8 sps:$4 sm:$0xff]   ;;  %v3023_v53 = vld [vmem:[%s3467_s24 + $0x1d4] ss:$8 sps:$4 sm:$0xff]  }
 0x220   : > { %2162 = vmatpush1.bf16.msra.mxu1 %v2934_v54  ;;  %v3026_v54 = vld [vmem:[%s3467_s24 + $0x3d4] ss:$8 sps:$4 sm:$0xff]  }
 0x221   : > { %2244 = vmatpush1.bf16.msra.mxu0 %v2935_v56  ;;  %2163 = vmatprep.subr.bf16.mxu1 %v2936_v57  ;;  %v3021_v56 = vld [vmem:[%s3467_s24 + $0x1d0] ss:$8 sps:$4 sm:$0xff]  }
 0x222   : > { %2245 = vmatprep.subr.bf16.mxu0 %v2938_v58  ;;  %v3024_v57 = vld [vmem:[%s3467_s24 + $0x3d0] ss:$8 sps:$4 sm:$0xff]   ;;  %v3029_v58 = vld [vmem:[%s3467_s24 + $0x1e4] ss:$8 sps:$4 sm:$0xff]  }
 0x224   : > { %2164 = vmatpush1.bf16.msra.mxu1 %v2940_v59  ;;  %v3032_v59 = vld [vmem:[%s3467_s24 + $0x3e4] ss:$8 sps:$4 sm:$0xff]  }
 0x225   : > { %2246 = vmatpush1.bf16.msra.mxu0 %v2941_v60  ;;  %2174 = vmatprep.subr.bf16.mxu1 %v2944_v61  ;;  %v3027_v60 = vld [vmem:[%s3467_s24 + $0x1e0] ss:$8 sps:$4 sm:$0xff]  }
 0x226   : > { %2256 = vmatprep.subr.bf16.mxu0 %v2948_v62  ;;  %v3030_v61 = vld [vmem:[%s3467_s24 + $0x3e0] ss:$8 sps:$4 sm:$0xff]   ;;  %v3035_v62 = vld [vmem:[%s3467_s24 + $0x1f4] ss:$8 sps:$4 sm:$0xff]  }
 0x227   : > { %2166 = vmatmul.mubr.bf16.vlgmr.msra.gmra.mrb[0].mxu1 %v3723_v3 }
 0x228   : > { %2248 = vmatmul.mubr.bf16.vlgmr.msra.gmra.mrb[0].mxu0 %v3725_v5  ;;  %2175 = vmatpush1.bf16.msra.mxu1 %v2942_v1  ;;  %v3038_v1 = vld [vmem:[%s3467_s24 + $0x3f4] ss:$8 sps:$4 sm:$0xff]  }
 0x229   : > { %2257 = vmatpush1.bf16.msra.mxu0 %v2946_v6  ;;  %2176 = vmatprep.subr.bf16.mxu1 %v2951_v9  ;;  %v3033_v6 = vld [vmem:[%s3467_s24 + $0x1f0] ss:$8 sps:$4 sm:$0xff]  }
 0x22a   : > { %2258 = vmatprep.subr.bf16.mxu0 %v2954_v10  ;;  %2206 = vmatprep.mubr.bf16.mxu1 %v1483_v11  ;;  %v3036_v9 = vld [vmem:[%s3467_s24 + $0x3f0] ss:$8 sps:$4 sm:$0xff]   ;;  %v1481_v11 = vcombine.high %v3723_v3, %v3723_v3  ;;  %v3043_v3 = vld [vmem:[%s3465_s30 + $0x50] sm:$0xff]  }
 0x22b   : > { %2288 = vmatprep.mubr.bf16.mxu0 %v1484_v12  ;;  %v3039_v10 = vld [vmem:[%s3465_s30 + $0x40] sm:$0xff]   ;;  %v1482_v12 = vcombine.high %v3725_v5, %v3725_v5  ;;  %v3045_v5 = vld [vmem:[%s3465_s30 + $0x58] sm:$0xff]  }
 0x22c   : > { %2177 = vmatpush1.bf16.msra.mxu1 %v2949_v13  ;;  %v3040_v13 = vld [vmem:[%s3465_s30] sm:$0xff]  }
 0x22d   : > { %2259 = vmatpush1.bf16.msra.mxu0 %v2952_v14  ;;  %2178 = vmatprep.subr.bf16.mxu1 %v2957_v15  ;;  %v3041_v14 = vld [vmem:[%s3465_s30 + $0x48] sm:$0xff]  }
 0x22e   : > { %2260 = vmatprep.subr.bf16.mxu0 %v2960_v16  ;;  %v3042_v15 = vld [vmem:[%s3465_s30 + $0x8] sm:$0xff]   ;;  %v3044_v16 = vld [vmem:[%s3465_s30 + $0x10] sm:$0xff]  }
 0x230   : > { %2179 = vmatpush1.bf16.msra.mxu1 %v2955_v17  ;;  %v3046_v17 = vld [vmem:[%s3465_s30 + $0x18] sm:$0xff]  }
 0x231   : > { %2261 = vmatpush1.bf16.msra.mxu0 %v2958_v18  ;;  %2180 = vmatprep.subr.bf16.mxu1 %v2963_v19  ;;  %v3047_v18 = vld [vmem:[%s3465_s30 + $0x60] sm:$0xff]  }
 0x232   : > { %2262 = vmatprep.subr.bf16.mxu0 %v2966_v20  ;;  %v3048_v19 = vld [vmem:[%s3465_s30 + $0x20] sm:$0xff]   ;;  %v3049_v20 = vld [vmem:[%s3465_s30 + $0x68] sm:$0xff]  }
 0x234   : > { %2181 = vmatpush1.bf16.msra.mxu1 %v2961_v21  ;;  %v3050_v21 = vld [vmem:[%s3465_s30 + $0x28] sm:$0xff]  }
 0x235   : > { %2263 = vmatpush1.bf16.msra.mxu0 %v2964_v22  ;;  %2182 = vmatprep.subr.bf16.mxu1 %v2969_v23  ;;  %v3051_v22 = vld [vmem:[%s3465_s30 + $0x70] sm:$0xff]  }
 0x236   : > { %2264 = vmatprep.subr.bf16.mxu0 %v2972_v24  ;;  %v3052_v23 = vld [vmem:[%s3465_s30 + $0x30] sm:$0xff]   ;;  %v3053_v24 = vld [vmem:[%s3465_s30 + $0x78] sm:$0xff]  }
 0x238   : > { %2183 = vmatpush1.bf16.msra.mxu1 %v2967_v25  ;;  %v3054_v25 = vld [vmem:[%s3465_s30 + $0x38] sm:$0xff]  }
 0x239   : > { %2265 = vmatpush1.bf16.msra.mxu0 %v2970_v26  ;;  %2184 = vmatprep.subr.bf16.mxu1 %v2975_v27  ;;  %v1427_v26 = vsub.s32 0, %v3692_v31  ;;  %v1423_v27 = vld [vmem:[%s842_s22] sm:$0x3] }
 0x23a   : > { %2266 = vmatprep.subr.bf16.mxu0 %v2978_v28  ;;  %v1431_v28 = vsub.s32 1, %v3692_v31 }
 0x23c   : > { %2185 = vmatpush1.bf16.msra.mxu1 %v2973_v29  ;;  %v1428_v29 = vrot.slane %v1423_v27, %v1427_v26 }
 0x23d   : > { %2267 = vmatpush1.bf16.msra.mxu0 %v2976_v30  ;;  %2186 = vmatprep.subr.bf16.mxu1 %v2981_v32  ;;  %v1432_v30 = vrot.slane %v1423_v27, %v1431_v28 }
 0x23e   : > { %2268 = vmatprep.subr.bf16.mxu0 %v2984_v33 }
 0x240   : > { %2187 = vmatpush1.bf16.msra.mxu1 %v2979_v34 }
 0x241   : > { %2269 = vmatpush1.bf16.msra.mxu0 %v2982_v35  ;;  %2188 = vmatprep.subr.bf16.mxu1 %v2987_v36 }
 0x242   : > { %2270 = vmatprep.subr.bf16.mxu0 %v2990_v37 }
 0x244   : > { %2189 = vmatpush1.bf16.msra.mxu1 %v2985_v38 }
 0x245   : > { %2271 = vmatpush1.bf16.msra.mxu0 %v2988_v39  ;;  %2190 = vmatprep.subr.bf16.mxu1 %v2993_v40 }
 0x246   : > { %2272 = vmatprep.subr.bf16.mxu0 %v2996_v41 }
 0x248   : > { %2191 = vmatpush1.bf16.msra.mxu1 %v2991_v51 }
 0x249   : > { %2273 = vmatpush1.bf16.msra.mxu0 %v2994_v42  ;;  %2192 = vmatprep.subr.bf16.mxu1 %v2999_v63 }
 0x24a   : > { %2274 = vmatprep.subr.bf16.mxu0 %v3002_v43 }
 0x24c   : > { %2193 = vmatpush1.bf16.msra.mxu1 %v2997_v44 }
 0x24d   : > { %2275 = vmatpush1.bf16.msra.mxu0 %v3000_v45  ;;  %2194 = vmatprep.subr.bf16.mxu1 %v3005_v46  ;;  %v2299_v46 = vld [vmem:[#allocation3] sm:$0x3] }
 0x24e   : > { %2276 = vmatprep.subr.bf16.mxu0 %v3008_v55 }
 0x250   : > { %2195 = vmatpush1.bf16.msra.mxu1 %v3003_v47 }
 0x251   : > { %2277 = vmatpush1.bf16.msra.mxu0 %v3006_v48  ;;  %2196 = vmatprep.subr.bf16.mxu1 %v3011_v2 }
 0x252   : > { %2278 = vmatprep.subr.bf16.mxu0 %v3014_v0 }
 0x254   : > { %2197 = vmatpush1.bf16.msra.mxu1 %v3009_v4 }
 0x255   : > { %2279 = vmatpush1.bf16.msra.mxu0 %v3012_v8  ;;  %2198 = vmatprep.subr.bf16.mxu1 %v3017_v7  ;;  %v2736_v8 = vld [vmem:[%s3860_s6] ss:$0 sm:$0xff] (!%p2735_p11) }
 0x256   : > { %2280 = vmatprep.subr.bf16.mxu0 %v3020_v49 }
 0x258   : > { %2199 = vmatpush1.bf16.msra.mxu1 %v3015_v50 }
 0x259   : > { %2281 = vmatpush1.bf16.msra.mxu0 %v3018_v52  ;;  %2200 = vmatprep.subr.bf16.mxu1 %v3023_v53 }
 0x25a   : > { %2282 = vmatprep.subr.bf16.mxu0 %v3026_v54 }
 0x25c   : > { %2201 = vmatpush1.bf16.msra.mxu1 %v3021_v56 }
 0x25d   : > { %2283 = vmatpush1.bf16.msra.mxu0 %v3024_v57  ;;  %2202 = vmatprep.subr.bf16.mxu1 %v3029_v58 }
 0x25e   : > { %2284 = vmatprep.subr.bf16.mxu0 %v3032_v59 }
 0x260   : > { %2203 = vmatpush1.bf16.msra.mxu1 %v3027_v60 }
 0x261   : > { %2285 = vmatpush1.bf16.msra.mxu0 %v3030_v61  ;;  %2204 = vmatprep.subr.bf16.mxu1 %v3035_v62 }
 0x262   : > { %2286 = vmatprep.subr.bf16.mxu0 %v3038_v1 }
 0x264   : > { %2205 = vmatpush1.bf16.msra.mxu1 %v3033_v6 }
 0x265   : > { %2287 = vmatpush1.bf16.msra.mxu0 %v3036_v9  ;;  %2742 = vmatprep.subr.bf16.mxu1 %v3039_v10 }
 0x267   : > { %2207 = vmatmul.mubr.bf16.vlgmr.msra.gmra.mrb[0].mxu1 %v1481_v11 }
 0x268   : > { %2289 = vmatmul.mubr.bf16.vlgmr.msra.gmra.mrb[0].mxu0 %v1482_v12  ;;  %2743 = vmatpush3.bf16.msra.mxu1 %v3040_v13 }
 0x269   : > { %2744 = vmatprep.subr.bf16.mxu1 %v3041_v14 }
 0x26c   : > { %2745 = vmatpush3.bf16.msra.mxu1 %v3042_v15 }
 0x26d   : > { %2746 = vmatprep.subr.bf16.mxu1 %v3043_v3 }
 0x270   : > { %2747 = vmatpush3.bf16.msra.mxu1 %v3044_v16 }
 0x271   : > { %2748 = vmatprep.subr.bf16.mxu1 %v3045_v5 }
 0x274   : > { %2749 = vmatpush3.bf16.msra.mxu1 %v3046_v17 }
 0x275   : > { %2750 = vmatprep.subr.bf16.mxu1 %v3047_v18 }
 0x278   : > { %2751 = vmatpush3.bf16.msra.mxu1 %v3048_v19 }
 0x279   : > { %2752 = vmatprep.subr.bf16.mxu1 %v3049_v20 }
 0x27c   : > { %2753 = vmatpush3.bf16.msra.mxu1 %v3050_v21 }
 0x27d   : > { %2754 = vmatprep.subr.bf16.mxu1 %v3051_v22 }
 0x280   : > { %2755 = vmatpush3.bf16.msra.mxu1 %v3052_v23 }
 0x281   : > { %2756 = vmatprep.subr.bf16.mxu1 %v3053_v24 }
 0x284   : > { %2757 = vmatpush3.bf16.msra.mxu1 %v3054_v25 }
 0x33a   : > { %v2208_v32 = vpop.f32.mrb[0].mxu1 }
 0x33b   : > { %v2290_v33 = vpop.f32.mrb[0].mxu0  ;;  %v2764_v34 = vadd.f32 %v2208_v32, %v1428_v29  ;;  %v2210_v35 = vpop.f32.mrb[1].mxu1 }
 0x33c   : > { %v2292_v36 = vpop.f32.mrb[1].mxu0  ;;  %v2766_v37 = vadd.f32 %v2210_v35, %v1432_v30  ;;  %v2212_v38 = vpop.f32.mrb[2].mxu1 }
 0x33d   : > { %v2294_v39 = vpop.f32.mrb[2].mxu0  ;;  %v2765_v40 = vadd.f32 %v2764_v34, %v2290_v33  ;;  %v2213_v41 = vpop.f32.mrb[3].mxu1 }
 0x33e   : > { %v2295_v51 = vpop.f32.mrb[3].mxu0  ;;  %v2767_v42 = vadd.f32 %v2766_v37, %v2292_v36 }
 0x33f   : > { %v2297_v63 = vmax.f32 %v2765_v40, 0.0 }
 0x340   : > { %v2298_v43 = vmax.f32 %v2767_v42, 0.0 }
 0x341   : > { %v2300_v45 = vpack.c.bf16 %v2297_v63, %v2297_v63 }
 0x342   : > { %v2301_v44 = vpack.c.bf16 %v2298_v43, %v2298_v43 }
 0x344   : > { %2462 = vmatprep.mubr.bf16.mxu1 %v2301_v44 }
 0x345   : > { %2463 = vmatmul.mubr.bf16.vlgmr.msra.gmra.mrb[4].mxu1 %v2300_v45 }
 0x418   : > { %v2758_v31 = vpop.f32.mrb[4].mxu1  ;;  %2476 = sbr.rel (%p2735_p11) target bundleno = 1065 (0x429), region = 94 }
 0x419   : > { %v2759_v55 = vpop.f32.mrb[5].mxu1 }
 0x41a   : > { %v2760_v47 = vadd.f32 %v2759_v55, %v2758_v31  ;;  %v2761_v48 = vpop.f32.mrb[6].mxu1 }
 0x41b   : > { %v2762_v2 = vpop.f32.mrb[7].mxu1 }
 0x41c   : > { %v2470_v0 = vadd.f32 %v2760_v47, %v2299_v46 }
 0x41e   : > { %2472 = vst.msk [vmem:[#allocation3] sm:$0x3] %vm2471_vm10, %v2470_v0 }
 0x425   : > { %v2477_v4 = vld [vmem:[#allocation3] sm:$0x3] }
 0x426   : > { %v2485_v7 = vadd.f32 %v2736_v8, %v2477_v4 }
 0x428   : > { %2486 = vst.msk [vmem:[#allocation5] sm:$0x3] %vm2471_vm10, %v2485_v7 }
 0x429 PF: > { %p2780_p12 = scmp.eq.s32.totalorder %s3171_s27, 1  ;;  %s3114_s30 = smov [#allocation5]  }
 0x42a   : > { %s2494_s19 = sshll.u32 %s3114_s30, 4  ;;  %s2495_s19 = int_to_ptr.vmem [resolvable:$true] %s2494_s19 }
 0x42b   : > { %s3055_s20 = scalar_lea.vmem %s2495_s19, 32  ;;  %p3062_p2 = scmp.lt.s32.totalorder %s2495_s19, %s2495_s19 }
 0x42c   : > { %p3056_p13 = scmp.ne.s32.totalorder %s2495_s19, %s3055_s20  ;;  %p3063_p3 = scmp.lt.s32.totalorder %s3055_s20, %s3055_s20 }
 0x42e   : > { %p3057_p0 = pnand %p3056_p13, %p2780_p12  ;;  %p3064_p4 = por %p3063_p3, %p3062_p2 }
 0x430   : > { %p3058_p1 = pneg %p3057_p0 }
 0x432   : > { %p3065_p5 = pnand %p3064_p4, %p3058_p1 }
 0x434   : > { %3068 = shalt.err (!%p3065_p5)
}
 0x435   : > { %s3069_s26 = scalar_lea.hbm %s3861_s7, 32 }
 0x436   : > { %p3070_p6 = scmp.ne.s32.totalorder %s3861_s7, %s3069_s26  ;;  %p3075_p9 = scmp.lt.u32.totalorder %s3069_s26, %s3861_s7 }
 0x438   : > { %p3071_p7 = pnand %p3070_p6, %p2780_p12 }
 0x43a   : > { %p3072_p8 = pneg %p3071_p7 }
 0x43c   : > { %p3077_p10 = pnand %p3075_p9, %p3072_p8 }
 0x43e   : > { %3080 = shalt.err (!%p3077_p10)
}
 0x43f   : > { %2777 = dma.vmem_to_hbm [thread:$0]  (%p2780_p12), %s2495_s19, 32, %s3861_s7, [#allocation6]  }
 0x440   : > { %3094 = dma.done.wait (%p2780_p12), [#allocation6], 32  }
 0x441   : > { %3096 = vsyncadd (%p2780_p12), [#allocation6], 4294967264 }
 0x442 PF: > { %p15_p11 = scmp.ge.s32.totalorder %s3174_s28, 4   ;;  %s3870_s24 = smov %s3103_s25 }
 0x443   : > { %s3871_s25 = smov %s3183_s8  ;;  %s3872_s26 = smov %s3174_s28 }
 0x444   :  { %17 = sbr.rel (!%p15_p11) target bundleno = 2 (0x2), region = 132 }
 0x44b   :  { %2507 = vsyncpa [#allocation6], 1 }
 0x44c   :  { %2509 = vsyncpa [#allocation6 + $0x1], 1 }

</bundles_post_ra>
